<compile_context>
chip_gen: v7x
topology: tpu7x:2x2x1
jax: 0.10.0
libtpu: 0.0.40
codegen_flags: <defaults>
</compile_context>

<pallas_src>
import numpy as np
import jax
import jax.numpy as jnp
from jax import lax
from jax.experimental import pallas as pl
from jax.experimental.pallas import tpu as pltpu

# ----------------------------- model constants ------------------------------
NUM_WS = 8          # number of W+ latents produced by the encoder
W_DIM = 32          # latent width
GEN_RES = 8         # resolution produced by the synthetic "generator.synthesis"
OUT_RES = 16        # SimpleCompressor.output_resolution (triggers F.interpolate)

C1_IN, C1_OUT = 4, 8        # encoder conv1: 4 -> 8  channels, k=3, s=1, p=1
C2_IN, C2_OUT = 8, 16       # encoder conv2: 8 -> 16 channels, k=3, s=2, p=1
N_W = NUM_WS * W_DIM        # 256 latent features

TAPS = [(dy, dx) for dy in range(3) for dx in range(3)]
NTAP = len(TAPS)            # 9
CH_BLK = 8                  # channel rows per tap block (8-sublane aligned)
KROWS = NTAP * CH_BLK       # 72: contraction depth of both conv matmuls

# Packed-slab row offsets (all section starts are 8-row aligned).
ROW_W1, ROW_W2 = 0, 8       # conv weights (+ bias in column KROWS)
ROW_RING, ROW_SEL = 24, 25  # padding-ring mask / stride-2 pooling mask
ROW_FCW, ROW_FCB = 32, 48
ROW_SYNW = 56
ROW_SYNB = ROW_SYNW + N_W   # 312
SLAB_ROWS = 320


def _round_up(n, m):
    return ((n + m - 1) // m) * m


# ------------------------- bilinear resize (linear) --------------------------
def bilinear_matrix(in_size, out_size):
    """Row-interpolation matrix matching F.interpolate(mode='bilinear',
    align_corners=False): out = R @ in along one spatial axis."""
    scale = in_size / out_size
    R = np.zeros((out_size, in_size), dtype=np.float32)
    for i in range(out_size):
        src = (i + 0.5) * scale - 0.5
        src = max(src, 0.0)
        i0 = min(int(np.floor(src)), in_size - 1)
        i1 = min(i0 + 1, in_size - 1)
        lam = src - i0
        R[i, i0] += 1.0 - lam
        R[i, i1] += lam
    return jnp.asarray(R)


def fold_resize_into_synthesis(syn_w, syn_b, out_res):
    """Compose the (linear) synthesis matmul with the (linear) bilinear resize
    so the kernel emits the final resolution directly.  Exact by linearity."""
    Rh = bilinear_matrix(GEN_RES, out_res)
    Rw = bilinear_matrix(GEN_RES, out_res)
    w4 = syn_w.reshape(-1, 3, GEN_RES, GEN_RES)
    w4 = jnp.einsum("iy,kcyx,jx->kcij", Rh, w4, Rw)
    b4 = jnp.einsum("iy,cyx,jx->cij", Rh, syn_b.reshape(3, GEN_RES, GEN_RES), Rw)
    return w4.reshape(syn_w.shape[0], -1), b4.reshape(-1)


# ------------------------------- parameters ----------------------------------
def init_params(key):
    ks = jax.random.split(key, 8)
    p = {}
    p["conv1_w"] = 0.1 * jax.random.normal(ks[0], (C1_OUT, C1_IN, 3, 3), jnp.float32)
    p["conv1_b"] = 0.01 * jax.random.normal(ks[1], (C1_OUT,), jnp.float32)
    p["conv2_w"] = 0.1 * jax.random.normal(ks[2], (C2_OUT, C2_IN, 3, 3), jnp.float32)
    p["conv2_b"] = 0.01 * jax.random.normal(ks[3], (C2_OUT,), jnp.float32)
    p["fc_w"]    = 0.1 * jax.random.normal(ks[4], (C2_OUT, N_W), jnp.float32)
    p["fc_b"]    = 0.01 * jax.random.normal(ks[5], (N_W,), jnp.float32)
    p["syn_w"]   = 0.1 * jax.random.normal(ks[6], (N_W, 3 * GEN_RES * GEN_RES), jnp.float32)
    p["syn_b"]   = 0.01 * jax.random.normal(ks[7], (3 * GEN_RES * GEN_RES,), jnp.float32)
    return p


def prepare_kernel_params(p, input_shape, output_resolution=OUT_RES):
    """One-time offline repack of all parameters + constant masks into a single
    f32 slab so the kernel receives exactly TWO operands (input + slab)."""
    B, cin, H, W = input_shape
    assert cin == C1_IN
    HP, WP = H + 2, W + 2
    NPAD = B * HP * WP
    OH, OW = H // 2, W // 2

    syn_w, syn_b = p["syn_w"], p["syn_b"]
    if output_resolution is not None and output_resolution != GEN_RES:
        syn_w, syn_b = fold_resize_into_synthesis(syn_w, syn_b, output_resolution)
    n_img = syn_w.shape[1]

    cols = _round_up(max(NPAD, n_img, N_W, KROWS + 1), 128)
    slab = jnp.zeros((SLAB_ROWS, cols), jnp.float32)

    # conv weights packed per tap into 8-row blocks; bias in column KROWS.
    w1p = jnp.zeros((C1_OUT, KROWS), jnp.float32)
    w2p = jnp.zeros((C2_OUT, KROWS), jnp.float32)
    for k, (dy, dx) in enumerate(TAPS):
        w1p = w1p.at[:, k * CH_BLK:k * CH_BLK + C1_IN].set(p["conv1_w"][:, :, dy, dx])
        w2p = w2p.at[:, k * CH_BLK:k * CH_BLK + C2_IN].set(p["conv2_w"][:, :, dy, dx])
    slab = slab.at[ROW_W1:ROW_W1 + C1_OUT, :KROWS].set(w1p)
    slab = slab.at[ROW_W1:ROW_W1 + C1_OUT, KROWS].set(p["conv1_b"])
    slab = slab.at[ROW_W2:ROW_W2 + C2_OUT, :KROWS].set(w2p)
    slab = slab.at[ROW_W2:ROW_W2 + C2_OUT, KROWS].set(p["conv2_b"])

    # Constant masks over the flattened zero-padded grid (b, y, x).
    y = np.arange(HP).reshape(1, HP, 1)
    xg = np.arange(WP).reshape(1, 1, WP)
    ring = ((y >= 1) & (y <= H) & (xg >= 1) & (xg <= W)).astype(np.float32)
    sel = ((y % 2 == 1) & (y <= 2 * OH - 1) &
           (xg % 2 == 1) & (xg <= 2 * OW - 1)).astype(np.float32) / float(OH * OW)
    ring = np.broadcast_to(ring, (B, HP, WP)).reshape(NPAD)
    sel = np.broadcast_to(sel, (B, HP, WP)).reshape(NPAD)
    slab = slab.at[ROW_RING, :NPAD].set(jnp.asarray(ring))
    slab = slab.at[ROW_SEL, :NPAD].set(jnp.asarray(sel))

    slab = slab.at[ROW_FCW:ROW_FCW + C2_OUT, :N_W].set(p["fc_w"])
    slab = slab.at[ROW_FCB, :N_W].set(p["fc_b"])
    slab = slab.at[ROW_SYNW:ROW_SYNW + N_W, :n_img].set(syn_w)
    slab = slab.at[ROW_SYNB, :n_img].set(syn_b)
    return {"slab": slab}


# ------------------------------ the fused kernel -----------------------------
def _make_kernel(B, WP, NPAD, M0, n_img, grid_cols):
    """conv1+ReLU -> conv2+ReLU -> GAP -> FC -> synthesis(+resize), fused.

    Static closure constants (Python ints): B, padded row width WP, number of
    padded-grid columns NPAD, margin offset M0, image feature count n_img and
    per-batch padded-grid size grid_cols.
    """
    tap_off = [(dy - 1) * WP + (dx - 1) for (dy, dx) in TAPS]   # flat tap shifts

    def kernel(x_ext_ref, slab_ref, out_ref, a1_scr, a2_scr, h1_scr):
        # ---- unpack the single packed constant slab (static slices) --------
        w1   = slab_ref[ROW_W1:ROW_W1 + C1_OUT, 0:KROWS]            # (8, 72)
        b1   = slab_ref[ROW_W1:ROW_W1 + C1_OUT, KROWS:KROWS + 1]    # (8, 1)
        w2   = slab_ref[ROW_W2:ROW_W2 + C2_OUT, 0:KROWS]            # (16, 72)
        b2   = slab_ref[ROW_W2:ROW_W2 + C2_OUT, KROWS:KROWS + 1]    # (16, 1)
        ring = slab_ref[ROW_RING:ROW_RING + 1, 0:NPAD]              # (1, NPAD)
        sel  = slab_ref[ROW_SEL:ROW_SEL + 1, 0:NPAD]                # (1, NPAD)
        fcw  = slab_ref[ROW_FCW:ROW_FCW + C2_OUT, 0:N_W]            # (16, 256)
        fcb  = slab_ref[ROW_FCB:ROW_FCB + 1, 0:N_W]                 # (1, 256)
        synw = slab_ref[ROW_SYNW:ROW_SYNW + N_W, 0:n_img]           # (256, n_img)
        synb = slab_ref[ROW_SYNB:ROW_SYNB + 1, 0:n_img]             # (1, n_img)

        # ---- conv1 (k=3, s=1, p=1): 9 shifted tap views -> ONE matmul -------
        # A tap (dy, dx) at padded position `col` reads flat index col+off on
        # the zero-margined flattened grid, so each tap view is a static slice.
        for k, off in enumerate(tap_off):
            a1_scr[CH_BLK * k:CH_BLK * (k + 1), :] = \
                x_ext_ref[:, M0 + off:M0 + off + NPAD]
        h1 = jnp.dot(w1, a1_scr[...], preferred_element_type=jnp.float32)  # (8, NPAD)
        # bias + ReLU, then zero the padding ring (= conv2's zero padding).
        h1 = jnp.maximum(h1 + b1, 0.0) * ring

        # Stash h1 with zero margins so conv2's tap views are plain slices too.
        h1_scr[...] = jnp.zeros_like(h1_scr)
        h1_scr[:, M0:M0 + NPAD] = h1

        # ---- conv2 (k=3, p=1) evaluated at stride 1 over the padded grid ----
        # (the stride-2 decimation is folded into the pooling mask below).
        for k, off in enumerate(tap_off):
            a2_scr[CH_BLK * k:CH_BLK * (k + 1), :] = \
                h1_scr[:, M0 + off:M0 + off + NPAD]
        h2 = jnp.dot(w2, a2_scr[...], preferred_element_type=jnp.float32)  # (16, NPAD)
        # bias + ReLU, then select the stride-2 positions and scale by 1/(OH*OW).
        h2 = jnp.maximum(h2 + b2, 0.0) * sel

        # ---- global average pool: per-batch lane reduction -> (B, 16) -------
        parts = [jnp.sum(h2[:, b * grid_cols:(b + 1) * grid_cols],
                         axis=1, keepdims=True) for b in range(B)]          # (16,1) each
        pooled = jnp.concatenate(parts, axis=1).T                           # (B, 16)

        # ---- FC -> W+ latents, synthesis (+folded resize) -> image ----------
        wp = jnp.dot(pooled, fcw, preferred_element_type=jnp.float32) + fcb   # (B, 256)
        img = jnp.dot(wp, synw, preferred_element_type=jnp.float32) + synb    # (B, n_img)

        # Single merged, lane-dense output buffer.
        out_ref[:, 0:N_W] = wp
        out_ref[:, N_W:N_W + n_img] = img

    return kernel


# ------------------------------ forward pass ----------------------------------
def simple_compressor_forward(x, kernel_params, output_resolution=OUT_RES,
                              noise_mode="const"):
    """Mirrors SimpleCompressor.forward -> (img, w_plus).

    noise_mode='const': the synthetic generator has no stochastic noise path.
    """
    B, cin, H, W = x.shape
    assert cin == C1_IN
    HP, WP = H + 2, W + 2
    NPAD = B * HP * WP
    M0 = WP + 1                                 # flat margin (max |tap shift|)
    EXT = _round_up(NPAD + 2 * M0, 128)
    res = output_resolution if output_resolution is not None else GEN_RES
    n_img = 3 * res * res

    slab = kernel_params["slab"]
    assert slab.shape[0] == SLAB_ROWS and slab.shape[1] >= max(NPAD, n_img)

    # Minimal residual host-side prep: one fused pad/relayout of the ~8 KB
    # input into a channel-major, zero-padded, flattened slab with a margin so
    # every conv tap inside the kernel is a static contiguous slice.
    # (No gather, no ~110 KB im2col intermediate, no bf16 cast.)
    xp = jnp.pad(x.astype(jnp.float32), ((0, 0), (0, 0), (1, 1), (1, 1)))
    xp = jnp.transpose(xp, (1, 0, 2, 3)).reshape(cin, NPAD)
    x_ext = jnp.zeros((CH_BLK, EXT), jnp.float32)
    x_ext = x_ext.at[:cin, M0:M0 + NPAD].set(xp)

    kernel = _make_kernel(B, WP, NPAD, M0, n_img, HP * WP)
    out = pl.pallas_call(
        kernel,
        out_shape=jax.ShapeDtypeStruct((B, N_W + n_img), jnp.float32),
        scratch_shapes=[
            pltpu.VMEM((KROWS, NPAD), jnp.float32),   # conv1 stacked tap operand
            pltpu.VMEM((KROWS, NPAD), jnp.float32),   # conv2 stacked tap operand
            pltpu.VMEM((CH_BLK, EXT), jnp.float32),   # h1 with zero margins
        ],
    )(x_ext, slab)

    w_plus = out[:, :N_W].reshape(B, NUM_WS, W_DIM)
    # `with torch.no_grad()` around synthesis/resize -> detach the image path.
    img = lax.stop_gradient(out[:, N_W:].reshape(B, 3, res, res))
    return img, w_plus


# -------------------------- pure-JAX reference (check) ------------------------
def _ref_forward(x, p, output_resolution=OUT_RES):
    """f32 reference mirroring the PyTorch module (independent conv impl)."""
    def conv(h, w, b, stride):
        o = lax.conv_general_dilated(
            h, w, window_strides=(stride, stride), padding=[(1, 1), (1, 1)],
            dimension_numbers=("NCHW", "OIHW", "NCHW"),
            precision=lax.Precision.HIGHEST)
        return jnp.maximum(o + b.reshape(1, -1, 1, 1), 0.0)

    B = x.shape[0]
    h = conv(x, p["conv1_w"], p["conv1_b"], 1)
    h = conv(h, p["conv2_w"], p["conv2_b"], 2)
    pooled = jnp.mean(h, axis=(2, 3))
    w_plus = (pooled @ p["fc_w"] + p["fc_b"]).reshape(B, NUM_WS, W_DIM)
    img = (w_plus.reshape(B, -1) @ p["syn_w"] + p["syn_b"]).reshape(B, 3, GEN_RES, GEN_RES)
    if output_resolution is not None and img.shape[2] != output_resolution:
        Rh = bilinear_matrix(GEN_RES, output_resolution)
        Rw = bilinear_matrix(GEN_RES, output_resolution)
        img = jnp.einsum("iy,bcyx,jx->bcij", Rh, img, Rw)
    return img, w_plus


# ----------------------------------- main -------------------------------------
if __name__ == "__main__":
    x = jax.random.normal(jax.random.PRNGKey(0), (2, 4, 16, 16), jnp.float32)  # NCHW
    params = init_params(jax.random.PRNGKey(42))
    kparams = prepare_kernel_params(params, x.shape, OUT_RES)   # offline repack

    fwd = jax.jit(simple_compressor_forward)
    img, w_plus = fwd(x, kparams)
    jax.block_until_ready((img, w_plus))

    assert img.shape == (2, 3, OUT_RES, OUT_RES), img.shape
    assert w_plus.shape == (2, NUM_WS, W_DIM), w_plus.shape

    img_ref, w_ref = _ref_forward(x, params, OUT_RES)
    np.testing.assert_allclose(np.asarray(w_plus), np.asarray(w_ref), rtol=2e-2, atol=2e-2)
    np.testing.assert_allclose(np.asarray(img), np.asarray(img_ref), rtol=2e-2, atol=2e-2)

    print("KERNEL_OK")
</pallas_src>

<mosaic_0001>
module attributes {stable_mosaic.version = 11 : i64} {
  func.func @kernel(%arg0: memref<8x768xf32, #tpu.memory_space<vmem>>, %arg1: memref<320x768xf32, #tpu.memory_space<vmem>>, %arg2: memref<2x1024xf32, #tpu.memory_space<vmem>>, %arg3: memref<72x648xf32, #tpu.memory_space<vmem>>, %arg4: memref<72x648xf32, #tpu.memory_space<vmem>>, %arg5: memref<8x768xf32, #tpu.memory_space<vmem>>) attributes {dimension_semantics = [], scalar_prefetch = 0 : i64, scratch_operands = 3 : i64, tpu.core_type = #tpu.core_type<tc>} {
    %c0 = arith.constant 0 : index
    %c0_0 = arith.constant 0 : index
    %0 = vector.load %arg1[%c0, %c0_0] : memref<320x768xf32, #tpu.memory_space<vmem>>, vector<8x72xf32>
    %c0_1 = arith.constant 0 : index
    %c72 = arith.constant 72 : index
    %1 = vector.load %arg1[%c0_1, %c72] : memref<320x768xf32, #tpu.memory_space<vmem>>, vector<8x1xf32>
    %c8 = arith.constant 8 : index
    %c0_2 = arith.constant 0 : index
    %2 = vector.load %arg1[%c8, %c0_2] : memref<320x768xf32, #tpu.memory_space<vmem>>, vector<16x72xf32>
    %c8_3 = arith.constant 8 : index
    %c72_4 = arith.constant 72 : index
    %3 = vector.load %arg1[%c8_3, %c72_4] : memref<320x768xf32, #tpu.memory_space<vmem>>, vector<16x1xf32>
    %c24 = arith.constant 24 : index
    %c0_5 = arith.constant 0 : index
    %4 = vector.load %arg1[%c24, %c0_5] : memref<320x768xf32, #tpu.memory_space<vmem>>, vector<1x648xf32>
    %c25 = arith.constant 25 : index
    %c0_6 = arith.constant 0 : index
    %5 = vector.load %arg1[%c25, %c0_6] : memref<320x768xf32, #tpu.memory_space<vmem>>, vector<1x648xf32>
    %c32 = arith.constant 32 : index
    %c0_7 = arith.constant 0 : index
    %6 = vector.load %arg1[%c32, %c0_7] : memref<320x768xf32, #tpu.memory_space<vmem>>, vector<16x256xf32>
    %c48 = arith.constant 48 : index
    %c0_8 = arith.constant 0 : index
    %7 = vector.load %arg1[%c48, %c0_8] : memref<320x768xf32, #tpu.memory_space<vmem>>, vector<1x256xf32>
    %c56 = arith.constant 56 : index
    %c0_9 = arith.constant 0 : index
    %8 = vector.load %arg1[%c56, %c0_9] : memref<320x768xf32, #tpu.memory_space<vmem>>, vector<256x768xf32>
    %c312 = arith.constant 312 : index
    %c0_10 = arith.constant 0 : index
    %9 = vector.load %arg1[%c312, %c0_10] : memref<320x768xf32, #tpu.memory_space<vmem>>, vector<1x768xf32>
    %c0_11 = arith.constant 0 : index
    %c0_12 = arith.constant 0 : index
    %10 = vector.load %arg0[%c0_11, %c0_12] : memref<8x768xf32, #tpu.memory_space<vmem>>, vector<8x648xf32>
    %c0_13 = arith.constant 0 : index
    %c0_14 = arith.constant 0 : index
    %11 = vector.load %arg3[%c0_13, %c0_14] : memref<72x648xf32, #tpu.memory_space<vmem>>, vector<8x648xf32>
    tpu.vector_store %arg3[%c0_13, %c0_14], %10 {strides = array<i32>} : memref<72x648xf32, #tpu.memory_space<vmem>>, vector<8x648xf32>,
    %c0_15 = arith.constant 0 : index
    %c1 = arith.constant 1 : index
    %12 = vector.load %arg0[%c0_15, %c1] : memref<8x768xf32, #tpu.memory_space<vmem>>, vector<8x648xf32>
    %c8_16 = arith.constant 8 : index
    %c0_17 = arith.constant 0 : index
    %13 = vector.load %arg3[%c8_16, %c0_17] : memref<72x648xf32, #tpu.memory_space<vmem>>, vector<8x648xf32>
    tpu.vector_store %arg3[%c8_16, %c0_17], %12 {strides = array<i32>} : memref<72x648xf32, #tpu.memory_space<vmem>>, vector<8x648xf32>,
    %c0_18 = arith.constant 0 : index
    %c2 = arith.constant 2 : index
    %14 = vector.load %arg0[%c0_18, %c2] : memref<8x768xf32, #tpu.memory_space<vmem>>, vector<8x648xf32>
    %c16 = arith.constant 16 : index
    %c0_19 = arith.constant 0 : index
    %15 = vector.load %arg3[%c16, %c0_19] : memref<72x648xf32, #tpu.memory_space<vmem>>, vector<8x648xf32>
    tpu.vector_store %arg3[%c16, %c0_19], %14 {strides = array<i32>} : memref<72x648xf32, #tpu.memory_space<vmem>>, vector<8x648xf32>,
    %c0_20 = arith.constant 0 : index
    %c18 = arith.constant 18 : index
    %16 = vector.load %arg0[%c0_20, %c18] : memref<8x768xf32, #tpu.memory_space<vmem>>, vector<8x648xf32>
    %c24_21 = arith.constant 24 : index
    %c0_22 = arith.constant 0 : index
    %17 = vector.load %arg3[%c24_21, %c0_22] : memref<72x648xf32, #tpu.memory_space<vmem>>, vector<8x648xf32>
    tpu.vector_store %arg3[%c24_21, %c0_22], %16 {strides = array<i32>} : memref<72x648xf32, #tpu.memory_space<vmem>>, vector<8x648xf32>,
    %c0_23 = arith.constant 0 : index
    %c19 = arith.constant 19 : index
    %18 = vector.load %arg0[%c0_23, %c19] : memref<8x768xf32, #tpu.memory_space<vmem>>, vector<8x648xf32>
    %c32_24 = arith.constant 32 : index
    %c0_25 = arith.constant 0 : index
    %19 = vector.load %arg3[%c32_24, %c0_25] : memref<72x648xf32, #tpu.memory_space<vmem>>, vector<8x648xf32>
    tpu.vector_store %arg3[%c32_24, %c0_25], %18 {strides = array<i32>} : memref<72x648xf32, #tpu.memory_space<vmem>>, vector<8x648xf32>,
    %c0_26 = arith.constant 0 : index
    %c20 = arith.constant 20 : index
    %20 = vector.load %arg0[%c0_26, %c20] : memref<8x768xf32, #tpu.memory_space<vmem>>, vector<8x648xf32>
    %c40 = arith.constant 40 : index
    %c0_27 = arith.constant 0 : index
    %21 = vector.load %arg3[%c40, %c0_27] : memref<72x648xf32, #tpu.memory_space<vmem>>, vector<8x648xf32>
    tpu.vector_store %arg3[%c40, %c0_27], %20 {strides = array<i32>} : memref<72x648xf32, #tpu.memory_space<vmem>>, vector<8x648xf32>,
    %c0_28 = arith.constant 0 : index
    %c36 = arith.constant 36 : index
    %22 = vector.load %arg0[%c0_28, %c36] : memref<8x768xf32, #tpu.memory_space<vmem>>, vector<8x648xf32>
    %c48_29 = arith.constant 48 : index
    %c0_30 = arith.constant 0 : index
    %23 = vector.load %arg3[%c48_29, %c0_30] : memref<72x648xf32, #tpu.memory_space<vmem>>, vector<8x648xf32>
    tpu.vector_store %arg3[%c48_29, %c0_30], %22 {strides = array<i32>} : memref<72x648xf32, #tpu.memory_space<vmem>>, vector<8x648xf32>,
    %c0_31 = arith.constant 0 : index
    %c37 = arith.constant 37 : index
    %24 = vector.load %arg0[%c0_31, %c37] : memref<8x768xf32, #tpu.memory_space<vmem>>, vector<8x648xf32>
    %c56_32 = arith.constant 56 : index
    %c0_33 = arith.constant 0 : index
    %25 = vector.load %arg3[%c56_32, %c0_33] : memref<72x648xf32, #tpu.memory_space<vmem>>, vector<8x648xf32>
    tpu.vector_store %arg3[%c56_32, %c0_33], %24 {strides = array<i32>} : memref<72x648xf32, #tpu.memory_space<vmem>>, vector<8x648xf32>,
    %c0_34 = arith.constant 0 : index
    %c38 = arith.constant 38 : index
    %26 = vector.load %arg0[%c0_34, %c38] : memref<8x768xf32, #tpu.memory_space<vmem>>, vector<8x648xf32>
    %c64 = arith.constant 64 : index
    %c0_35 = arith.constant 0 : index
    %27 = vector.load %arg3[%c64, %c0_35] : memref<72x648xf32, #tpu.memory_space<vmem>>, vector<8x648xf32>
    tpu.vector_store %arg3[%c64, %c0_35], %26 {strides = array<i32>} : memref<72x648xf32, #tpu.memory_space<vmem>>, vector<8x648xf32>,
    %c0_36 = arith.constant 0 : index
    %c0_37 = arith.constant 0 : index
    %28 = vector.load %arg3[%c0_36, %c0_37] : memref<72x648xf32, #tpu.memory_space<vmem>>, vector<72x648xf32>
    %cst = arith.constant dense<0.000000e+00> : vector<8x648xf32>
    %29 = tpu.matmul %0, %28, %cst {dimension_numbers = #tpu.dot_dimension_numbers<[1], [0], [0], [1], [0, 0, 1, 1], [], []>} : vector<8x72xf32>, vector<72x648xf32>, vector<8x648xf32> -> vector<8x648xf32>
    %30 = vector.broadcast %1 : vector<8x1xf32> to vector<8x648xf32>
    %31 = arith.addf %29, %30 : vector<8x648xf32>
    %cst_38 = arith.constant 0.000000e+00 : f32
    %32 = vector.broadcast %cst_38 : f32 to vector<8x648xf32>
    %33 = arith.maximumf %31, %32 : vector<8x648xf32>
    %34 = vector.broadcast %4 : vector<1x648xf32> to vector<8x648xf32>
    %35 = arith.mulf %33, %34 : vector<8x648xf32>
    %cst_39 = arith.constant 0.000000e+00 : f32
    %36 = vector.broadcast %cst_39 : f32 to vector<8x768xf32>
    %c0_40 = arith.constant 0 : index
    %c0_41 = arith.constant 0 : index
    %37 = vector.load %arg5[%c0_40, %c0_41] : memref<8x768xf32, #tpu.memory_space<vmem>>, vector<8x768xf32>
    tpu.vector_store %arg5[%c0_40, %c0_41], %36 {strides = array<i32>} : memref<8x768xf32, #tpu.memory_space<vmem>>, vector<8x768xf32>,
    %c0_42 = arith.constant 0 : index
    %c19_43 = arith.constant 19 : index
    %38 = vector.load %arg5[%c0_42, %c19_43] : memref<8x768xf32, #tpu.memory_space<vmem>>, vector<8x648xf32>
    tpu.vector_store %arg5[%c0_42, %c19_43], %35 {strides = array<i32>} : memref<8x768xf32, #tpu.memory_space<vmem>>, vector<8x648xf32>,
    %c0_44 = arith.constant 0 : index
    %c0_45 = arith.constant 0 : index
    %39 = vector.load %arg5[%c0_44, %c0_45] : memref<8x768xf32, #tpu.memory_space<vmem>>, vector<8x648xf32>
    %c0_46 = arith.constant 0 : index
    %c0_47 = arith.constant 0 : index
    %40 = vector.load %arg4[%c0_46, %c0_47] : memref<72x648xf32, #tpu.memory_space<vmem>>, vector<8x648xf32>
    tpu.vector_store %arg4[%c0_46, %c0_47], %39 {strides = array<i32>} : memref<72x648xf32, #tpu.memory_space<vmem>>, vector<8x648xf32>,
    %c0_48 = arith.constant 0 : index
    %c1_49 = arith.constant 1 : index
    %41 = vector.load %arg5[%c0_48, %c1_49] : memref<8x768xf32, #tpu.memory_space<vmem>>, vector<8x648xf32>
    %c8_50 = arith.constant 8 : index
    %c0_51 = arith.constant 0 : index
    %42 = vector.load %arg4[%c8_50, %c0_51] : memref<72x648xf32, #tpu.memory_space<vmem>>, vector<8x648xf32>
    tpu.vector_store %arg4[%c8_50, %c0_51], %41 {strides = array<i32>} : memref<72x648xf32, #tpu.memory_space<vmem>>, vector<8x648xf32>,
    %c0_52 = arith.constant 0 : index
    %c2_53 = arith.constant 2 : index
    %43 = vector.load %arg5[%c0_52, %c2_53] : memref<8x768xf32, #tpu.memory_space<vmem>>, vector<8x648xf32>
    %c16_54 = arith.constant 16 : index
    %c0_55 = arith.constant 0 : index
    %44 = vector.load %arg4[%c16_54, %c0_55] : memref<72x648xf32, #tpu.memory_space<vmem>>, vector<8x648xf32>
    tpu.vector_store %arg4[%c16_54, %c0_55], %43 {strides = array<i32>} : memref<72x648xf32, #tpu.memory_space<vmem>>, vector<8x648xf32>,
    %c0_56 = arith.constant 0 : index
    %c18_57 = arith.constant 18 : index
    %45 = vector.load %arg5[%c0_56, %c18_57] : memref<8x768xf32, #tpu.memory_space<vmem>>, vector<8x648xf32>
    %c24_58 = arith.constant 24 : index
    %c0_59 = arith.constant 0 : index
    %46 = vector.load %arg4[%c24_58, %c0_59] : memref<72x648xf32, #tpu.memory_space<vmem>>, vector<8x648xf32>
    tpu.vector_store %arg4[%c24_58, %c0_59], %45 {strides = array<i32>} : memref<72x648xf32, #tpu.memory_space<vmem>>, vector<8x648xf32>,
    %c0_60 = arith.constant 0 : index
    %c19_61 = arith.constant 19 : index
    %47 = vector.load %arg5[%c0_60, %c19_61] : memref<8x768xf32, #tpu.memory_space<vmem>>, vector<8x648xf32>
    %c32_62 = arith.constant 32 : index
    %c0_63 = arith.constant 0 : index
    %48 = vector.load %arg4[%c32_62, %c0_63] : memref<72x648xf32, #tpu.memory_space<vmem>>, vector<8x648xf32>
    tpu.vector_store %arg4[%c32_62, %c0_63], %47 {strides = array<i32>} : memref<72x648xf32, #tpu.memory_space<vmem>>, vector<8x648xf32>,
    %c0_64 = arith.constant 0 : index
    %c20_65 = arith.constant 20 : index
    %49 = vector.load %arg5[%c0_64, %c20_65] : memref<8x768xf32, #tpu.memory_space<vmem>>, vector<8x648xf32>
    %c40_66 = arith.constant 40 : index
    %c0_67 = arith.constant 0 : index
    %50 = vector.load %arg4[%c40_66, %c0_67] : memref<72x648xf32, #tpu.memory_space<vmem>>, vector<8x648xf32>
    tpu.vector_store %arg4[%c40_66, %c0_67], %49 {strides = array<i32>} : memref<72x648xf32, #tpu.memory_space<vmem>>, vector<8x648xf32>,
    %c0_68 = arith.constant 0 : index
    %c36_69 = arith.constant 36 : index
    %51 = vector.load %arg5[%c0_68, %c36_69] : memref<8x768xf32, #tpu.memory_space<vmem>>, vector<8x648xf32>
    %c48_70 = arith.constant 48 : index
    %c0_71 = arith.constant 0 : index
    %52 = vector.load %arg4[%c48_70, %c0_71] : memref<72x648xf32, #tpu.memory_space<vmem>>, vector<8x648xf32>
    tpu.vector_store %arg4[%c48_70, %c0_71], %51 {strides = array<i32>} : memref<72x648xf32, #tpu.memory_space<vmem>>, vector<8x648xf32>,
    %c0_72 = arith.constant 0 : index
    %c37_73 = arith.constant 37 : index
    %53 = vector.load %arg5[%c0_72, %c37_73] : memref<8x768xf32, #tpu.memory_space<vmem>>, vector<8x648xf32>
    %c56_74 = arith.constant 56 : index
    %c0_75 = arith.constant 0 : index
    %54 = vector.load %arg4[%c56_74, %c0_75] : memref<72x648xf32, #tpu.memory_space<vmem>>, vector<8x648xf32>
    tpu.vector_store %arg4[%c56_74, %c0_75], %53 {strides = array<i32>} : memref<72x648xf32, #tpu.memory_space<vmem>>, vector<8x648xf32>,
    %c0_76 = arith.constant 0 : index
    %c38_77 = arith.constant 38 : index
    %55 = vector.load %arg5[%c0_76, %c38_77] : memref<8x768xf32, #tpu.memory_space<vmem>>, vector<8x648xf32>
    %c64_78 = arith.constant 64 : index
    %c0_79 = arith.constant 0 : index
    %56 = vector.load %arg4[%c64_78, %c0_79] : memref<72x648xf32, #tpu.memory_space<vmem>>, vector<8x648xf32>
    tpu.vector_store %arg4[%c64_78, %c0_79], %55 {strides = array<i32>} : memref<72x648xf32, #tpu.memory_space<vmem>>, vector<8x648xf32>,
    %c0_80 = arith.constant 0 : index
    %c0_81 = arith.constant 0 : index
    %57 = vector.load %arg4[%c0_80, %c0_81] : memref<72x648xf32, #tpu.memory_space<vmem>>, vector<72x648xf32>
    %cst_82 = arith.constant dense<0.000000e+00> : vector<16x648xf32>
    %58 = tpu.matmul %2, %57, %cst_82 {dimension_numbers = #tpu.dot_dimension_numbers<[1], [0], [0], [1], [0, 0, 1, 1], [], []>} : vector<16x72xf32>, vector<72x648xf32>, vector<16x648xf32> -> vector<16x648xf32>
    %59 = vector.broadcast %3 : vector<16x1xf32> to vector<16x648xf32>
    %60 = arith.addf %58, %59 : vector<16x648xf32>
    %cst_83 = arith.constant 0.000000e+00 : f32
    %61 = vector.broadcast %cst_83 : f32 to vector<16x648xf32>
    %62 = arith.maximumf %60, %61 : vector<16x648xf32>
    %63 = vector.broadcast %5 : vector<1x648xf32> to vector<16x648xf32>
    %64 = arith.mulf %62, %63 : vector<16x648xf32>
    %65 = vector.extract_strided_slice %64 {offsets = [0, 0], sizes = [16, 324], strides = [1, 1]} : vector<16x648xf32> to vector<16x324xf32>
    %cst_84 = arith.constant dense<0.000000e+00> : vector<16xf32>
    %66 = vector.multi_reduction <add>, %65, %cst_84 [1] : vector<16x324xf32> to vector<16xf32>
    %67 = vector.shape_cast %66 : vector<16xf32> to vector<16x1xf32>
    %68 = vector.extract_strided_slice %64 {offsets = [0, 324], sizes = [16, 324], strides = [1, 1]} : vector<16x648xf32> to vector<16x324xf32>
    %cst_85 = arith.constant dense<0.000000e+00> : vector<16xf32>
    %69 = vector.multi_reduction <add>, %68, %cst_85 [1] : vector<16x324xf32> to vector<16xf32>
    %70 = vector.shape_cast %69 : vector<16xf32> to vector<16x1xf32>
    %71 = tpu.concatenate %67, %70 in 1 : vector<16x1xf32>, vector<16x1xf32> -> vector<16x2xf32>
    %72 = tpu.transpose %71, [1, 0] : vector<16x2xf32> -> vector<2x16xf32>
    %cst_86 = arith.constant dense<0.000000e+00> : vector<2x256xf32>
    %73 = tpu.matmul %72, %6, %cst_86 {dimension_numbers = #tpu.dot_dimension_numbers<[1], [0], [0], [1], [0, 0, 1, 1], [], []>} : vector<2x16xf32>, vector<16x256xf32>, vector<2x256xf32> -> vector<2x256xf32>
    %74 = vector.broadcast %7 : vector<1x256xf32> to vector<2x256xf32>
    %75 = arith.addf %73, %74 : vector<2x256xf32>
    %cst_87 = arith.constant dense<0.000000e+00> : vector<2x768xf32>
    %76 = tpu.matmul %75, %8, %cst_87 {dimension_numbers = #tpu.dot_dimension_numbers<[1], [0], [0], [1], [0, 0, 1, 1], [], []>} : vector<2x256xf32>, vector<256x768xf32>, vector<2x768xf32> -> vector<2x768xf32>
    %77 = vector.broadcast %9 : vector<1x768xf32> to vector<2x768xf32>
    %78 = arith.addf %76, %77 : vector<2x768xf32>
    %c0_88 = arith.constant 0 : index
    %c0_89 = arith.constant 0 : index
    %79 = vector.load %arg2[%c0_88, %c0_89] : memref<2x1024xf32, #tpu.memory_space<vmem>>, vector<2x256xf32>
    tpu.vector_store %arg2[%c0_88, %c0_89], %75 {strides = array<i32>} : memref<2x1024xf32, #tpu.memory_space<vmem>>, vector<2x256xf32>,
    %c0_90 = arith.constant 0 : index
    %c256 = arith.constant 256 : index
    %80 = vector.load %arg2[%c0_90, %c256] : memref<2x1024xf32, #tpu.memory_space<vmem>>, vector<2x768xf32>
    tpu.vector_store %arg2[%c0_90, %c256], %78 {strides = array<i32>} : memref<2x1024xf32, #tpu.memory_space<vmem>>, vector<2x768xf32>,
    return
  }
}

</mosaic_0001>

<bundles_post_ra>
// kernel: simple_compressor_forward.1
= control target key start
LH: loop header
LB: loop body
LE: loop exit
PB: predicated region body
PF: predicated region fallthrough
CT: control target
= control target key end

     0   :  { %7 = vsyncpa [#allocation6], 0  ;;  %s2464_s9 = smov [#allocation5]   ;;  %s2981_s0 = inlined_call_operand.vmem [shape: f32[8,768], index: 0, kind: input, shape index: {}]   ;;  %s2982_s1 = inlined_call_operand.hbm [shape: f32[320,768], index: 1, kind: input, shape index: {}]   ;;  %s2983_s2 = inlined_call_operand.vmem [shape: f32[2,1024], index: 2, kind: output, shape index: {}]  }
   0x1   :  { %s15_s10 = sshll.u32 %s2464_s9, 4  ;;  %s2440_s13 = scalar_lea.hbm %s2982_s1, 30720  ;;  %s16_s10 = int_to_ptr.vmem [resolvable:$true] %s15_s10 }
   0x2   :  { %p2441_p0 = scmp.ne.s32.totalorder %s2982_s1, %s2440_s13  ;;  %p2444_p1 = scmp.lt.u32.totalorder %s2440_s13, %s2982_s1 }
   0x4   :  { %p2446_p2 = pnand %p2444_p1, %p2441_p0 }
   0x6   :  { %2449 = shalt.err (!%p2446_p2)
}
   0x7   :  { %s2450_s18 = scalar_lea.vmem %s16_s10, 30720  ;;  %p2455_p4 = scmp.lt.s32.totalorder %s16_s10, %s16_s10 }
   0x8   :  { %p2451_p3 = scmp.ne.s32.totalorder %s16_s10, %s2450_s18  ;;  %p2456_p5 = scmp.lt.s32.totalorder %s2450_s18, %s2450_s18 }
   0xa   :  { %p2457_p6 = por %p2456_p5, %p2455_p4 }
   0xc   :  { %p2458_p7 = pnand %p2457_p6, %p2451_p3 }
   0xe   :  { %2461 = shalt.err (!%p2458_p7)
}
   0xf   :  { %s2465_s19 = smov 768   ;;  %s2466_s20 = smov 48  }
  0x10   :  { %21 = dma.hbm_to_vmem [thread:$0]  %s2982_s1, 30720, %s16_s10, [#allocation6], %s2465_s19, %s2465_s19, %s2466_s20  }
  0x11   :  { %2462 = dma.done.wait [#allocation6], 30720  }
  0x12   :  { %2463 = vsyncadd [#allocation6], 4294936576  ;;  %v2510_v0 = vld [vmem:[%s2981_s0 + $0x8] sm:$0xff]  ;;  %v2515_v1 = vld [vmem:[%s2981_s0] sm:$0xff]  ;;  %s2467_s29 = smov 127   ;;  %s2468_s5 = smov 126  }
  0x13   :  { %v2520_v2 = vld [vmem:[%s2981_s0 + $0x10] sm:$0xff]  ;;  %265 = vrot.lane.b32.xlu0 %v2510_v0, %s2467_s29  ;;  %263 = vrot.lane.b32.xlu1 %v2515_v1, %s2467_s29  ;;  %v2529_v3 = vld [vmem:[%s2981_s0 + $0x18] sm:$0xff]  ;;  %s2469_s6 = smov 110   ;;  %s2470_s7 = smov 109   ;;  %v2474_v5 = vmov 0.0   ;;  %vm249_vm0 = vcmask 64512  }
  0x14   :  { %v2534_v4 = vld [vmem:[%s2981_s0 + $0x20] sm:$0xff]  ;;  %s2471_s8 = smov 108   ;;  %s2472_s9 = smov 92   ;;  %713 = vmatprep.mubr.f32.mxu0 %v2474_v5  ;;  %905 = vst [vmem:[#allocation4] sm:$0xff] %v2474_v5  ;;  %910 = vst [vmem:[#allocation4 + $0x28] sm:$0xff] %v2474_v5  ;;  %1575 = vmatprep.mubr.f32.mxu1 %v2474_v5  ;;  %v256_v6 = vld [vmem:[%s2981_s0 + $0x28] sm:$0xff] }
  0x15   :  { %s2473_s10 = smov 91   ;;  %s2475_s11 = smov 90   ;;  %250 = vst.msk [vmem:[#allocation2 + $0x28] sm:$0xff] %vm249_vm0, %v256_v6  ;;  %v2628_v7 = vld [vmem:[#allocation5] sm:$0xff]  ;;  %v2476_v8 = vmov 72   ;;  %vm275_vm1 = vcmask 1039360  }
  0x16   :  { %2438 = vset.pattern.permute.xlu0 %v2476_v8  ;;  %2439 = vset.pattern.permute.xlu1 %v2476_v8  ;;  %vm317_vm2 = vcmask 1031168   ;;  %vm359_vm3 = vcmask 900096   ;;  %vm401_vm4 = vcmask 891904   ;;  %vm443_vm5 = vcmask 883712   ;;  %s2477_s0 = smov 19   ;;  %s2478_s14 = smov 60  }
  0x17   :  { %267 = vrot.lane.b32.xlu0 %v2520_v2, %s2467_s29  ;;  %307 = vrot.lane.b32.xlu1 %v2510_v0, %s2468_s5  ;;  %vm485_vm6 = vcmask 752640   ;;  %vm527_vm7 = vcmask 744448   ;;  %vm569_vm8 = vcmask 736256   ;;  %vm646_vm9 = vcmask 588800  }
  0x18   :  { %vm941_vm10 = vcmask 1047704   ;;  %vm929_vm11 = vcmask 154624   ;;  %vm947_vm12 = vcmask 220160   ;;  %vm1644_vm13 = vcmask 556032  }
  0x19   :  { %vm1678_vm14 = vcmask 490496   ;;  %vm1701_vm15 = vcmask 7168  }
  0x1b   :  { %309 = vrot.lane.b32.xlu0 %v2520_v2, %s2468_s5  ;;  %349 = vrot.lane.b32.xlu1 %v2510_v0, %s2469_s6 }
  0x1f   :  { %351 = vrot.lane.b32.xlu0 %v2520_v2, %s2469_s6  ;;  %305 = vrot.lane.b32.xlu1 %v2515_v1, %s2468_s5 }
  0x23   :  { %347 = vrot.lane.b32.xlu0 %v2515_v1, %s2469_s6  ;;  %391 = vrot.lane.b32.xlu1 %v2510_v0, %s2470_s7 }
  0x27   :  { %393 = vrot.lane.b32.xlu0 %v2520_v2, %s2470_s7  ;;  %433 = vrot.lane.b32.xlu1 %v2510_v0, %s2471_s8 }
  0x2b   :  { %435 = vrot.lane.b32.xlu0 %v2520_v2, %s2471_s8  ;;  %389 = vrot.lane.b32.xlu1 %v2515_v1, %s2470_s7 }
  0x2f   :  { %431 = vrot.lane.b32.xlu0 %v2515_v1, %s2471_s8  ;;  %475 = vrot.lane.b32.xlu1 %v2510_v0, %s2472_s9 }
  0x33   :  { %477 = vrot.lane.b32.xlu0 %v2520_v2, %s2472_s9  ;;  %517 = vrot.lane.b32.xlu1 %v2510_v0, %s2473_s10 }
  0x37   :  { %519 = vrot.lane.b32.xlu0 %v2520_v2, %s2473_s10  ;;  %473 = vrot.lane.b32.xlu1 %v2515_v1, %s2472_s9 }
  0x3b   :  { %515 = vrot.lane.b32.xlu0 %v2515_v1, %s2473_s10  ;;  %269 = vrot.lane.b32.xlu1 %v2529_v3, %s2467_s29 }
  0x3f   :  { %271 = vrot.lane.b32.xlu0 %v2534_v4, %s2467_s29  ;;  %559 = vrot.lane.b32.xlu1 %v2510_v0, %s2475_s11 }
  0x43   :  { %561 = vrot.lane.b32.xlu0 %v2520_v2, %s2475_s11  ;;  %557 = vrot.lane.b32.xlu1 %v2515_v1, %s2475_s11 }
  0x47   :  { %311 = vrot.lane.b32.xlu0 %v2529_v3, %s2468_s5  ;;  %313 = vrot.lane.b32.xlu1 %v2534_v4, %s2468_s5 }
  0x4b   :  { %353 = vrot.lane.b32.xlu0 %v2529_v3, %s2469_s6  ;;  %355 = vrot.lane.b32.xlu1 %v2534_v4, %s2469_s6 }
  0x4f   :  { %395 = vrot.lane.b32.xlu0 %v2529_v3, %s2470_s7  ;;  %397 = vrot.lane.b32.xlu1 %v2534_v4, %s2470_s7 }
  0x53   :  { %437 = vrot.lane.b32.xlu0 %v2529_v3, %s2471_s8  ;;  %439 = vrot.lane.b32.xlu1 %v2534_v4, %s2471_s8 }
  0x57   :  { %479 = vrot.lane.b32.xlu0 %v2529_v3, %s2472_s9  ;;  %481 = vrot.lane.b32.xlu1 %v2534_v4, %s2472_s9 }
  0x5b   :  { %521 = vrot.lane.b32.xlu0 %v2529_v3, %s2473_s10  ;;  %523 = vrot.lane.b32.xlu1 %v2534_v4, %s2473_s10 }
  0x5f   :  { %563 = vrot.lane.b32.xlu0 %v2529_v3, %s2475_s11  ;;  %565 = vrot.lane.b32.xlu1 %v2534_v4, %s2475_s11 }
  0x63   :  { %273 = vrot.lane.b32.xlu0 %v256_v6, %s2467_s29  ;;  %315 = vrot.lane.b32.xlu1 %v256_v6, %s2468_s5 }
  0x67   :  { %357 = vrot.lane.b32.xlu0 %v256_v6, %s2469_s6  ;;  %399 = vrot.lane.b32.xlu1 %v256_v6, %s2470_s7 }
  0x6b   :  { %441 = vrot.lane.b32.xlu0 %v256_v6, %s2471_s8  ;;  %483 = vrot.lane.b32.xlu1 %v256_v6, %s2472_s9 }
  0x6f   :  { %525 = vrot.lane.b32.xlu0 %v256_v6, %s2473_s10  ;;  %567 = vrot.lane.b32.xlu1 %v256_v6, %s2475_s11 }
  0x73   :  { %643 = vperm.xlu0 %2438, %v2628_v7  }
  0x85   :  { %v266_v9 = vpop.permute.xlu0 %265  ;;  %v264_v10 = vpop.permute.xlu1 %263 }
  0x86   :  { %v276_v11 = vsel %vm275_vm1, %v264_v10, %v266_v9 }
  0x87   :  { %v2132_v16 = vpack.c.bf16 %v276_v11, %v2515_v1 }
  0x89   :  { %v268_v12 = vpop.permute.xlu0 %267  ;;  %v308_v13 = vpop.permute.xlu1 %307 }
  0x8a   :  { %v277_v14 = vsel %vm275_vm1, %v266_v9, %v268_v12 }
  0x8b   :  { %v2130_v15 = vpack.c.bf16 %v277_v14, %v2510_v0 }
  0x8d   :  { %v2635_v17 = vpop.permute.xlu0 %309  ;;  %v350_v18 = vpop.permute.xlu1 %349  ;;  %2131 = vmatprep.subr.bf16.mxu0 %v2130_v15 }
  0x8e   :  { %v319_v19 = vsel %vm317_vm2, %v308_v13, %v2635_v17  ;;  %2133 = vmatpush1.bf16.msra.mxu0 %v2132_v16 }
  0x91   :  { %v2639_v20 = vpop.permute.xlu0 %351  ;;  %v306_v21 = vpop.permute.xlu1 %305 }
  0x92   :  { %v361_v22 = vsel %vm359_vm3, %v350_v18, %v2639_v20  ;;  %v318_v23 = vsel %vm317_vm2, %v306_v21, %v308_v13 }
  0x93   :  { %v2134_v24 = vpack.c.bf16 %v361_v22, %v319_v19 }
  0x95   :  { %v348_v25 = vpop.permute.xlu0 %347  ;;  %v392_v26 = vpop.permute.xlu1 %391  ;;  %2135 = vmatprep.subr.bf16.mxu0 %v2134_v24 }
  0x96   :  { %v360_v27 = vsel %vm359_vm3, %v348_v25, %v350_v18 }
  0x97   :  { %v2136_v28 = vpack.c.bf16 %v360_v27, %v318_v23 }
  0x99   :  { %v2645_v29 = vpop.permute.xlu0 %393  ;;  %v434_v30 = vpop.permute.xlu1 %433  ;;  %2137 = vmatpush1.bf16.msra.mxu0 %v2136_v28 }
  0x9a   :  { %v403_v31 = vsel %vm401_vm4, %v392_v26, %v2645_v29 }
  0x9d   :  { %v2649_v32 = vpop.permute.xlu0 %435  ;;  %v390_v33 = vpop.permute.xlu1 %389 }
  0x9e   :  { %v445_v34 = vsel %vm443_vm5, %v434_v30, %v2649_v32  ;;  %v402_v35 = vsel %vm401_vm4, %v390_v33, %v392_v26 }
  0x9f   :  { %v2138_v36 = vpack.c.bf16 %v445_v34, %v403_v31 }
  0xa1   :  { %v432_v37 = vpop.permute.xlu0 %431  ;;  %v476_v38 = vpop.permute.xlu1 %475  ;;  %2139 = vmatprep.subr.bf16.mxu0 %v2138_v36 }
  0xa2   :  { %v444_v39 = vsel %vm443_vm5, %v432_v37, %v434_v30 }
  0xa3   :  { %v2140_v40 = vpack.c.bf16 %v444_v39, %v402_v35 }
  0xa5   :  { %v478_v41 = vpop.permute.xlu0 %477  ;;  %v518_v42 = vpop.permute.xlu1 %517  ;;  %2141 = vmatpush1.bf16.msra.mxu0 %v2140_v40 }
  0xa6   :  { %v487_v43 = vsel %vm485_vm6, %v476_v38, %v478_v41 }
  0xa9   :  { %v520_v44 = vpop.permute.xlu0 %519  ;;  %v474_v45 = vpop.permute.xlu1 %473 }
  0xaa   :  { %v529_v46 = vsel %vm527_vm7, %v518_v42, %v520_v44  ;;  %v486_v47 = vsel %vm485_vm6, %v474_v45, %v476_v38 }
  0xab   :  { %v2142_v48 = vpack.c.bf16 %v529_v46, %v487_v43 }
  0xad   :  { %v516_v49 = vpop.permute.xlu0 %515  ;;  %v270_v50 = vpop.permute.xlu1 %269  ;;  %2143 = vmatprep.subr.bf16.mxu0 %v2142_v48 }
  0xae   :  { %v528_v51 = vsel %vm527_vm7, %v516_v49, %v518_v42  ;;  %v278_v52 = vsel %vm275_vm1, %v268_v12, %v270_v50 }
  0xaf   :  { %v2144_v53 = vpack.c.bf16 %v528_v51, %v486_v47  ;;  %v2148_v62 = vpack.c.bf16 %v278_v52, %v2520_v2 }
  0xb1   :  { %v272_v54 = vpop.permute.xlu0 %271  ;;  %v560_v55 = vpop.permute.xlu1 %559  ;;  %2145 = vmatpush1.bf16.msra.mxu0 %v2144_v53 }
  0xb2   :  { %v279_v56 = vsel %vm275_vm1, %v270_v50, %v272_v54 }
  0xb3   :  { %v2146_v61 = vpack.c.bf16 %v279_v56, %v2529_v3 }
  0xb5   :  { %v562_v57 = vpop.permute.xlu0 %561  ;;  %v558_v58 = vpop.permute.xlu1 %557 }
  0xb6   :  { %v571_v59 = vsel %vm569_vm8, %v560_v55, %v562_v57  ;;  %v570_v60 = vsel %vm569_vm8, %v558_v58, %v560_v55 }
  0xb7   :  { %665 = vmatprep.subr.mxu0 %v571_v59 }
  0xb8   :  { %666 = vmatpush1.msra.mxu0 %v570_v60 }
  0xb9   :  { %v312_v63 = vpop.permute.xlu0 %311  ;;  %v314_v0 = vpop.permute.xlu1 %313  ;;  %2118 = vmatmul.mubr.msk.f32.vlgmr.msra.gmra.mrb[0].mxu0 %vm646_vm9, %v2628_v7  ;;  %2147 = vmatprep.subr.bf16.mxu0 %v2146_v61 }
  0xba   :  { %v320_v1 = vsel %vm317_vm2, %v2635_v17, %v312_v63  ;;  %v321_v6 = vsel %vm317_vm2, %v312_v63, %v314_v0  ;;  %2149 = vmatpush1.bf16.msra.mxu0 %v2148_v62  ;;  %784 = vmatprep.mubr.f32.mxu0 %v2474_v5 }
  0xbd   :  { %v354_v8 = vpop.permute.xlu0 %353  ;;  %v356_v9 = vpop.permute.xlu1 %355 }
  0xbe   :  { %v362_v3 = vsel %vm359_vm3, %v2639_v20, %v354_v8  ;;  %v363_v2 = vsel %vm359_vm3, %v354_v8, %v356_v9 }
  0xbf   :  { %v2150_v10 = vpack.c.bf16 %v363_v2, %v321_v6  ;;  %v2152_v11 = vpack.c.bf16 %v362_v3, %v320_v1  ;;  %v29_v2 = vld [vmem:[#allocation5 + $0x90] ss:$8 sm:$0xf] }
  0xc1   :  { %v396_v12 = vpop.permute.xlu0 %395  ;;  %v398_v13 = vpop.permute.xlu1 %397  ;;  %2151 = vmatprep.subr.bf16.mxu0 %v2150_v10  ;;  %v30_v10 = vld [vmem:[#allocation5 + $0x90] ss:$8 sm:$0x30] }
  0xc2   :  { %v404_v14 = vsel %vm401_vm4, %v2645_v29, %v396_v12  ;;  %v405_v15 = vsel %vm401_vm4, %v396_v12, %v398_v13  ;;  %2153 = vmatpush1.bf16.msra.mxu0 %v2152_v11  ;;  %v31_v11 = vor.u32 %v30_v10, %v29_v2 }
  0xc5   :  { %v438_v16 = vpop.permute.xlu0 %437  ;;  %v440_v17 = vpop.permute.xlu1 %439 }
  0xc6   :  { %v446_v18 = vsel %vm443_vm5, %v2649_v32, %v438_v16  ;;  %v447_v19 = vsel %vm443_vm5, %v438_v16, %v440_v17 }
  0xc7   :  { %v2154_v20 = vpack.c.bf16 %v447_v19, %v405_v15  ;;  %v2156_v21 = vpack.c.bf16 %v446_v18, %v404_v14 }
  0xc9   :  { %v480_v22 = vpop.permute.xlu0 %479  ;;  %v482_v23 = vpop.permute.xlu1 %481  ;;  %2155 = vmatprep.subr.bf16.mxu0 %v2154_v20 }
  0xca   :  { %v488_v24 = vsel %vm485_vm6, %v478_v41, %v480_v22  ;;  %v489_v25 = vsel %vm485_vm6, %v480_v22, %v482_v23  ;;  %2157 = vmatpush1.bf16.msra.mxu0 %v2156_v21 }
  0xcd   :  { %v522_v26 = vpop.permute.xlu0 %521  ;;  %v524_v27 = vpop.permute.xlu1 %523 }
  0xce   :  { %v530_v28 = vsel %vm527_vm7, %v520_v44, %v522_v26  ;;  %v531_v29 = vsel %vm527_vm7, %v522_v26, %v524_v27  ;;  %v592_v44 = vld [vmem:[#allocation2 + $0x28] sm:$0xff] }
  0xcf   :  { %v2158_v30 = vpack.c.bf16 %v531_v29, %v489_v25  ;;  %v2160_v31 = vpack.c.bf16 %v530_v28, %v488_v24 }
  0xd1   :  { %v564_v32 = vpop.permute.xlu0 %563  ;;  %v566_v33 = vpop.permute.xlu1 %565  ;;  %2159 = vmatprep.subr.bf16.mxu0 %v2158_v30 }
  0xd2   :  { %v572_v34 = vsel %vm569_vm8, %v562_v57, %v564_v32  ;;  %v573_v35 = vsel %vm569_vm8, %v564_v32, %v566_v33  ;;  %2161 = vmatpush1.bf16.msra.mxu0 %v2160_v31 }
  0xd3   :  { %736 = vmatprep.subr.mxu0 %v573_v35 }
  0xd5   :  { %v274_v36 = vpop.permute.xlu0 %273  ;;  %v316_v37 = vpop.permute.xlu1 %315 }
  0xd6   :  { %v280_v38 = vsel %vm275_vm1, %v272_v54, %v274_v36  ;;  %292 = vst.msk [vmem:[#allocation2 + $0x58] sm:$0xff] %vm249_vm0, %v274_v36  ;;  %v322_v39 = vsel %vm317_vm2, %v314_v0, %v316_v37  ;;  %334 = vst.msk [vmem:[#allocation2 + $0x88] sm:$0xff] %vm249_vm0, %v316_v37  ;;  %737 = vmatpush1.msra.mxu0 %v572_v34 }
  0xd7   :  { %2119 = vmatmul.mubr.msk.f32.vlgmr.msra.gmra.mrb[2].mxu0 %vm646_vm9, %v2628_v7  ;;  %v2164_v51 = vpack.c.bf16 %v280_v38, %v2534_v4 }
  0xd8   :  { %855 = vmatprep.mubr.f32.mxu0 %v2474_v5 }
  0xd9   :  { %v358_v40 = vpop.permute.xlu0 %357  ;;  %v400_v41 = vpop.permute.xlu1 %399 }
  0xda   :  { %v364_v42 = vsel %vm359_vm3, %v356_v9, %v358_v40  ;;  %376 = vst.msk [vmem:[#allocation2 + $0xb8] sm:$0xff] %vm249_vm0, %v358_v40  ;;  %v406_v43 = vsel %vm401_vm4, %v398_v13, %v400_v41  ;;  %418 = vst.msk [vmem:[#allocation2 + $0xe8] sm:$0xff] %vm249_vm0, %v400_v41  ;;  %v869_v9 = vlaneseq }
  0xdb   :  { %v2168_v59 = vpack.c.bf16 %v364_v42, %v322_v39 }
  0xdc   :  { %v2709_v3 = vshrl.u32 %v869_v9, 7 }
  0xdd   :  { %v442_v45 = vpop.permute.xlu0 %441  ;;  %v484_v46 = vpop.permute.xlu1 %483  ;;  %v598_v47 = vld [vmem:[#allocation2 + $0x58] sm:$0xff]  ;;  %v604_v52 = vld [vmem:[#allocation2 + $0x88] sm:$0xff] }
  0xde   :  { %v448_v48 = vsel %vm443_vm5, %v440_v17, %v442_v45  ;;  %460 = vst.msk [vmem:[#allocation2 + $0x118] sm:$0xff] %vm249_vm0, %v442_v45  ;;  %v490_v49 = vsel %vm485_vm6, %v482_v23, %v484_v46  ;;  %502 = vst.msk [vmem:[#allocation2 + $0x148] sm:$0xff] %vm249_vm0, %v484_v46  ;;  %v2162_v50 = vpack.c.bf16 %v598_v47, %v592_v44  ;;  %v2712_v12 = vsub.s32 0, %v2709_v3 }
  0xdf   :  { %v2172_v62 = vpack.c.bf16 %v448_v48, %v406_v43  ;;  %v2715_v14 = vsub.s32 1, %v2709_v3  ;;  %v2722_v24 = vsub.s32 2, %v2709_v3  ;;  %v2725_v25 = vsub.s32 3, %v2709_v3 }
  0xe0   :  { %2163 = vmatprep.subr.bf16.mxu0 %v2162_v50  ;;  %v872_v17 = vrot.slane %v31_v11, %v2712_v12  ;;  %v2732_v36 = vsub.s32 4, %v2709_v3  ;;  %v2735_v37 = vsub.s32 5, %v2709_v3 }
  0xe1   :  { %v526_v53 = vpop.permute.xlu0 %525  ;;  %v568_v54 = vpop.permute.xlu1 %567  ;;  %2165 = vmatpush1.bf16.msra.mxu0 %v2164_v51  ;;  %v610_v55 = vld [vmem:[#allocation2 + $0xb8] sm:$0xff]  ;;  %v616_v60 = vld [vmem:[#allocation2 + $0xe8] sm:$0xff]  ;;  %v876_v20 = vrot.slane %v31_v11, %v2715_v14  ;;  %v880_v28 = vrot.slane %v31_v11, %v2722_v24  ;;  %v884_v31 = vrot.slane %v31_v11, %v2725_v25 }
  0xe2   :  { %v532_v56 = vsel %vm527_vm7, %v524_v27, %v526_v53  ;;  %544 = vst.msk [vmem:[#allocation2 + $0x178] sm:$0xff] %vm249_vm0, %v526_v53  ;;  %v574_v57 = vsel %vm569_vm8, %v566_v33, %v568_v54  ;;  %586 = vst.msk [vmem:[#allocation2 + $0x1a8] sm:$0xff] %vm249_vm0, %v568_v54  ;;  %v2166_v58 = vpack.c.bf16 %v610_v55, %v604_v52 }
  0xe3   :  { %v2176_v6 = vpack.c.bf16 %v532_v56, %v490_v49  ;;  %v888_v40 = vrot.slane %v31_v11, %v2732_v36  ;;  %v892_v43 = vrot.slane %v31_v11, %v2735_v37 }
  0xe4   :  { %2167 = vmatprep.subr.bf16.mxu0 %v2166_v58 }
  0xe5   :  { %2169 = vmatpush1.bf16.msra.mxu0 %v2168_v59  ;;  %v622_v4 = vld [vmem:[#allocation2 + $0x118] sm:$0xff]  ;;  %v628_v63 = vld [vmem:[#allocation2 + $0x148] sm:$0xff] }
  0xe6   :  { %v2170_v61 = vpack.c.bf16 %v622_v4, %v616_v60  ;;  %v2845_v4 = vld [vmem:[#allocation5 + $0x60] sm:$0xff] }
  0xe8   :  { %2171 = vmatprep.subr.bf16.mxu0 %v2170_v61  ;;  %v2847_v61 = vld [vmem:[#allocation5 + $0x30] sm:$0xff] }
  0xe9   :  { %2173 = vmatpush1.bf16.msra.mxu0 %v2172_v62  ;;  %v634_v0 = vld [vmem:[#allocation2 + $0x178] sm:$0xff]  ;;  %v640_v8 = vld [vmem:[#allocation2 + $0x1a8] sm:$0xff] }
  0xea   :  { %v2174_v1 = vpack.c.bf16 %v634_v0, %v628_v63 }
  0xec   :  { %2175 = vmatprep.subr.bf16.mxu0 %v2174_v1 }
  0xed   :  { %2177 = vmatpush1.bf16.msra.mxu0 %v2176_v6 }
  0xee   :  { %807 = vmatprep.subr.mxu0 %v640_v8 }
  0xf1   :  { %808 = vmatpush1.msra.mxu0 %v574_v57 }
  0xf2   :  { %2120 = vmatmul.mubr.msk.f32.vlgmr.msra.gmra.mrb[4].mxu0 %vm646_vm9, %v2628_v7  ;;  %v644_v13 = vpop.permute.xlu0 %643 }
  0xf3   :  { %1421 = vmatprep.mubr.f32.mxu0 %v2474_v5 }
 0x18c   :  { %v715_v15 = vpop.f32.mrb[0].mxu0 }
 0x18d   :  { %v716_v16 = vadd.f32 %v715_v15, %v644_v13  ;;  %v717_v7 = vpop.f32.mrb[1].mxu0 }
 0x18e   :  { %v718_v18 = vadd.f32 %v717_v7, %v644_v13 }
 0x18f   :  { %v862_v19 = vmax.f32 %v716_v16, 0.0 }
 0x190   :  { %v863_v21 = vmax.f32 %v718_v18, 0.0 }
 0x191   :  { %v899_v22 = vmul.f32 %v872_v17, %v862_v19 }
 0x192   :  { %v900_v23 = vmul.f32 %v876_v20, %v863_v21 }
 0x193   :  { %917 = vrot.lane.b32.xlu1 %v899_v22, %s2477_s0 }
 0x197   :  { %919 = vrot.lane.b32.xlu1 %v900_v23, %s2477_s0 }
 0x1aa   :  { %v786_v26 = vpop.f32.mrb[2].mxu0 }
 0x1ab   :  { %v787_v27 = vadd.f32 %v786_v26, %v644_v13  ;;  %v788_v29 = vpop.f32.mrb[3].mxu0 }
 0x1ac   :  { %v789_v30 = vadd.f32 %v788_v29, %v644_v13 }
 0x1ad   :  { %v864_v32 = vmax.f32 %v787_v27, 0.0 }
 0x1ae   :  { %v865_v33 = vmax.f32 %v789_v30, 0.0 }
 0x1af   :  { %v901_v34 = vmul.f32 %v880_v28, %v864_v32 }
 0x1b0   :  { %v902_v35 = vmul.f32 %v884_v31, %v865_v33 }
 0x1b1   :  { %921 = vrot.lane.b32.xlu0 %v901_v34, %s2477_s0 }
 0x1b2   :  { %923 = vrot.lane.b32.xlu1 %v902_v35, %s2477_s0 }
 0x1c5   :  { %v857_v38 = vpop.f32.mrb[4].mxu0 }
 0x1c6   :  { %v858_v39 = vadd.f32 %v857_v38, %v644_v13  ;;  %v859_v41 = vpop.f32.mrb[5].mxu0 }
 0x1c7   :  { %v860_v42 = vadd.f32 %v859_v41, %v644_v13 }
 0x1c8   :  { %v866_v44 = vmax.f32 %v858_v39, 0.0 }
 0x1c9   :  { %v867_v45 = vmax.f32 %v860_v42, 0.0 }
 0x1ca   :  { %v903_v46 = vmul.f32 %v888_v40, %v866_v44 }
 0x1cb   :  { %v904_v47 = vmul.f32 %v892_v43, %v867_v45 }
 0x1cc   :  { %925 = vrot.lane.b32.xlu0 %v903_v46, %s2477_s0 }
 0x1cd   :  { %927 = vrot.lane.b32.xlu1 %v904_v47, %s2477_s0 }
 0x205   :  { %v918_v48 = vpop.permute.xlu1 %917 }
 0x206   :  { %942 = vst.msk [vmem:[#allocation4] sm:$0xff] %vm941_vm10, %v918_v48 }
 0x209   :  { %v920_v49 = vpop.permute.xlu1 %919 }
 0x20a   :  { %v2742_v50 = vsel %vm929_vm11, %v918_v48, %v920_v49 }
 0x20d   :  { %v2744_v51 = vld [vmem:[#allocation4] sm:$0xff] }
 0x20e   :  { %1014 = vrot.lane.b32.xlu1 %v2744_v51, %s2468_s5  ;;  %973 = vrot.lane.b32.xlu0 %v2744_v51, %s2467_s29 }
 0x212   :  { %1096 = vrot.lane.b32.xlu1 %v2744_v51, %s2470_s7  ;;  %1055 = vrot.lane.b32.xlu0 %v2744_v51, %s2469_s6 }
 0x216   :  { %1178 = vrot.lane.b32.xlu1 %v2744_v51, %s2472_s9  ;;  %1137 = vrot.lane.b32.xlu0 %v2744_v51, %s2471_s8 }
 0x21a   :  { %1260 = vrot.lane.b32.xlu1 %v2744_v51, %s2475_s11  ;;  %1219 = vrot.lane.b32.xlu0 %v2744_v51, %s2473_s10 }
 0x21e   :  { %1016 = vrot.lane.b32.xlu1 %v2742_v50, %s2468_s5  ;;  %975 = vrot.lane.b32.xlu0 %v2742_v50, %s2467_s29 }
 0x222   :  { %1057 = vrot.lane.b32.xlu1 %v2742_v50, %s2469_s6 }
 0x223   :  { %v922_v52 = vpop.permute.xlu0 %921 }
 0x224   :  { %v2769_v53 = vsel %vm929_vm11, %v920_v49, %v922_v52  ;;  %v924_v54 = vpop.permute.xlu1 %923 }
 0x225   :  { %v2772_v55 = vsel %vm929_vm11, %v922_v52, %v924_v54  ;;  %1018 = vrot.lane.b32.xlu0 %v2769_v53, %s2468_s5 }
 0x226   :  { %1098 = vrot.lane.b32.xlu1 %v2742_v50, %s2470_s7 }
 0x229   :  { %1059 = vrot.lane.b32.xlu0 %v2769_v53, %s2469_s6 }
 0x22a   :  { %1139 = vrot.lane.b32.xlu1 %v2742_v50, %s2471_s8 }
 0x22d   :  { %1100 = vrot.lane.b32.xlu0 %v2769_v53, %s2470_s7 }
 0x22e   :  { %1180 = vrot.lane.b32.xlu1 %v2742_v50, %s2472_s9 }
 0x231   :  { %1141 = vrot.lane.b32.xlu0 %v2769_v53, %s2471_s8 }
 0x232   :  { %1221 = vrot.lane.b32.xlu1 %v2742_v50, %s2473_s10 }
 0x235   :  { %1182 = vrot.lane.b32.xlu0 %v2769_v53, %s2472_s9 }
 0x236   :  { %1262 = vrot.lane.b32.xlu1 %v2742_v50, %s2475_s11 }
 0x239   :  { %1223 = vrot.lane.b32.xlu0 %v2769_v53, %s2473_s10 }
 0x23a   :  { %977 = vrot.lane.b32.xlu1 %v2769_v53, %s2467_s29 }
 0x23d   :  { %1264 = vrot.lane.b32.xlu0 %v2769_v53, %s2475_s11 }
 0x23e   :  { %v926_v56 = vpop.permute.xlu0 %925  ;;  %979 = vrot.lane.b32.xlu1 %v2772_v55, %s2467_s29 }
 0x23f   :  { %v2803_v57 = vsel %vm929_vm11, %v924_v54, %v926_v56  ;;  %v928_v58 = vpop.permute.xlu1 %927 }
 0x240   :  { %v934_v59 = vsel %vm929_vm11, %v926_v56, %v928_v58 }
 0x241   :  { %948 = vst.msk [vmem:[#allocation4 + $0x28] sm:$0xff] %vm947_vm12, %v934_v59  ;;  %981 = vrot.lane.b32.xlu0 %v2803_v57, %s2467_s29 }
 0x242   :  { %1020 = vrot.lane.b32.xlu1 %v2772_v55, %s2468_s5 }
 0x245   :  { %1022 = vrot.lane.b32.xlu0 %v2803_v57, %s2468_s5 }
 0x246   :  { %1061 = vrot.lane.b32.xlu1 %v2772_v55, %s2469_s6 }
 0x248   :  { %v1007_v60 = vld [vmem:[#allocation4 + $0x28] sm:$0xff] }
 0x249   :  { %1063 = vrot.lane.b32.xlu0 %v2803_v57, %s2469_s6  ;;  %960 = vst.msk [vmem:[#allocation3 + $0x28] sm:$0xff] %vm249_vm0, %v1007_v60 }
 0x24a   :  { %1102 = vrot.lane.b32.xlu1 %v2772_v55, %s2470_s7 }
 0x24d   :  { %1104 = vrot.lane.b32.xlu0 %v2803_v57, %s2470_s7 }
 0x24e   :  { %1143 = vrot.lane.b32.xlu1 %v2772_v55, %s2471_s8 }
 0x251   :  { %1145 = vrot.lane.b32.xlu0 %v2803_v57, %s2471_s8 }
 0x252   :  { %1184 = vrot.lane.b32.xlu1 %v2772_v55, %s2472_s9 }
 0x255   :  { %1186 = vrot.lane.b32.xlu0 %v2803_v57, %s2472_s9 }
 0x256   :  { %1225 = vrot.lane.b32.xlu1 %v2772_v55, %s2473_s10 }
 0x259   :  { %1227 = vrot.lane.b32.xlu0 %v2803_v57, %s2473_s10 }
 0x25a   :  { %1024 = vrot.lane.b32.xlu1 %v1007_v60, %s2468_s5 }
 0x25d   :  { %983 = vrot.lane.b32.xlu0 %v1007_v60, %s2467_s29 }
 0x25e   :  { %1106 = vrot.lane.b32.xlu1 %v1007_v60, %s2470_s7 }
 0x261   :  { %1065 = vrot.lane.b32.xlu0 %v1007_v60, %s2469_s6 }
 0x262   :  { %1188 = vrot.lane.b32.xlu1 %v1007_v60, %s2472_s9 }
 0x265   :  { %1147 = vrot.lane.b32.xlu0 %v1007_v60, %s2471_s8 }
 0x266   :  { %1266 = vrot.lane.b32.xlu1 %v2772_v55, %s2475_s11 }
 0x269   :  { %1229 = vrot.lane.b32.xlu0 %v1007_v60, %s2473_s10 }
 0x26a   :  { %1270 = vrot.lane.b32.xlu1 %v1007_v60, %s2475_s11 }
 0x26d   :  { %1268 = vrot.lane.b32.xlu0 %v2803_v57, %s2475_s11 }
 0x26e   :  { %1350 = vperm.xlu1 %2439, %v2845_v4  }
 0x271   :  { %1345 = vperm.xlu0 %2438, %v2847_v61  }
 0x280   :  { %v974_v62 = vpop.permute.xlu0 %973  ;;  %v1015_v63 = vpop.permute.xlu1 %1014 }
 0x284   :  { %v1056_v0 = vpop.permute.xlu0 %1055  ;;  %v1097_v1 = vpop.permute.xlu1 %1096 }
 0x288   :  { %v1138_v6 = vpop.permute.xlu0 %1137  ;;  %v1179_v8 = vpop.permute.xlu1 %1178 }
 0x28c   :  { %v1220_v9 = vpop.permute.xlu0 %1219  ;;  %v1261_v2 = vpop.permute.xlu1 %1260 }
 0x290   :  { %v976_v10 = vpop.permute.xlu0 %975  ;;  %v1017_v11 = vpop.permute.xlu1 %1016 }
 0x291   :  { %v985_v13 = vsel %vm275_vm1, %v974_v62, %v976_v10  ;;  %v1026_v15 = vsel %vm317_vm2, %v1015_v63, %v1017_v11 }
 0x292   :  { %v2180_v47 = vpack.c.bf16 %v985_v13, %v2744_v51 }
 0x294   :  { %v1058_v16 = vpop.permute.xlu1 %1057 }
 0x295   :  { %v1067_v17 = vsel %vm359_vm3, %v1056_v0, %v1058_v16 }
 0x296   :  { %v2184_v58 = vpack.c.bf16 %v1067_v17, %v1026_v15 }
 0x297   :  { %v1019_v7 = vpop.permute.xlu0 %1018 }
 0x298   :  { %v1099_v18 = vpop.permute.xlu1 %1098  ;;  %v1027_v19 = vsel %vm317_vm2, %v1017_v11, %v1019_v7 }
 0x299   :  { %v1108_v20 = vsel %vm401_vm4, %v1097_v1, %v1099_v18 }
 0x29b   :  { %v1060_v21 = vpop.permute.xlu0 %1059 }
 0x29c   :  { %v1140_v22 = vpop.permute.xlu1 %1139  ;;  %v1068_v23 = vsel %vm359_vm3, %v1058_v16, %v1060_v21 }
 0x29d   :  { %v1149_v26 = vsel %vm443_vm5, %v1138_v6, %v1140_v22  ;;  %v2182_v52 = vpack.c.bf16 %v1068_v23, %v1027_v19 }
 0x29e   :  { %v2188_v63 = vpack.c.bf16 %v1149_v26, %v1108_v20 }
 0x29f   :  { %v1101_v27 = vpop.permute.xlu0 %1100 }
 0x2a0   :  { %v1181_v28 = vpop.permute.xlu1 %1180  ;;  %v1109_v29 = vsel %vm401_vm4, %v1099_v18, %v1101_v27 }
 0x2a1   :  { %v1190_v30 = vsel %vm485_vm6, %v1179_v8, %v1181_v28 }
 0x2a3   :  { %v1142_v31 = vpop.permute.xlu0 %1141 }
 0x2a4   :  { %v1222_v32 = vpop.permute.xlu1 %1221  ;;  %v1150_v33 = vsel %vm443_vm5, %v1140_v22, %v1142_v31 }
 0x2a5   :  { %v1231_v34 = vsel %vm527_vm7, %v1220_v9, %v1222_v32  ;;  %v2186_v60 = vpack.c.bf16 %v1150_v33, %v1109_v29 }
 0x2a7   :  { %v1183_v35 = vpop.permute.xlu0 %1182 }
 0x2a8   :  { %v1263_v38 = vpop.permute.xlu1 %1262  ;;  %v1191_v39 = vsel %vm485_vm6, %v1181_v28, %v1183_v35 }
 0x2a9   :  { %v1272_v40 = vsel %vm569_vm8, %v1261_v2, %v1263_v38  ;;  %v2192_v2 = vpack.c.bf16 %v1231_v34, %v1190_v30 }
 0x2ab   :  { %v2864_v41 = vpop.permute.xlu0 %1223 }
 0x2ac   :  { %v978_v42 = vpop.permute.xlu1 %977  ;;  %v1232_v43 = vsel %vm527_vm7, %v1222_v32, %v2864_v41 }
 0x2ad   :  { %v986_v44 = vsel %vm275_vm1, %v976_v10, %v978_v42  ;;  %v2190_v6 = vpack.c.bf16 %v1232_v43, %v1191_v39 }
 0x2ae   :  { %v2178_v45 = vpack.c.bf16 %v986_v44, %v2742_v50 }
 0x2af   :  { %v2870_v46 = vpop.permute.xlu0 %1264 }
 0x2b0   :  { %v980_v48 = vpop.permute.xlu1 %979  ;;  %v1273_v49 = vsel %vm569_vm8, %v1263_v38, %v2870_v46  ;;  %2179 = vmatprep.subr.bf16.mxu0 %v2178_v45 }
 0x2b1   :  { %v987_v54 = vsel %vm275_vm1, %v978_v42, %v980_v48  ;;  %2181 = vmatpush1.bf16.msra.mxu0 %v2180_v47 }
 0x2b2   :  { %2183 = vmatprep.subr.bf16.mxu0 %v2182_v52  ;;  %v2196_v19 = vpack.c.bf16 %v987_v54, %v2769_v53  ;;  %v1294_v52 = vld [vmem:[#allocation3 + $0x28] sm:$0xff] }
 0x2b3   :  { %v2876_v56 = vpop.permute.xlu0 %981 }
 0x2b4   :  { %v1021_v59 = vpop.permute.xlu1 %1020  ;;  %v988_v50 = vsel %vm275_vm1, %v980_v48, %v2876_v56 }
 0x2b5   :  { %v1028_v51 = vsel %vm317_vm2, %v1019_v7, %v1021_v59  ;;  %2185 = vmatpush1.bf16.msra.mxu0 %v2184_v58  ;;  %v2194_v7 = vpack.c.bf16 %v988_v50, %v2772_v55 }
 0x2b6   :  { %2187 = vmatprep.subr.bf16.mxu0 %v2186_v60 }
 0x2b7   :  { %v1023_v62 = vpop.permute.xlu0 %1022 }
 0x2b8   :  { %v1062_v0 = vpop.permute.xlu1 %1061  ;;  %v1029_v1 = vsel %vm317_vm2, %v1021_v59, %v1023_v62 }
 0x2b9   :  { %v1069_v8 = vsel %vm359_vm3, %v1060_v21, %v1062_v0  ;;  %2189 = vmatpush1.bf16.msra.mxu0 %v2188_v63 }
 0x2ba   :  { %2191 = vmatprep.subr.bf16.mxu0 %v2190_v6  ;;  %v2200_v26 = vpack.c.bf16 %v1069_v8, %v1028_v51 }
 0x2bb   :  { %v1064_v9 = vpop.permute.xlu0 %1063 }
 0x2bc   :  { %v1103_v10 = vpop.permute.xlu1 %1102  ;;  %v1070_v11 = vsel %vm359_vm3, %v1062_v0, %v1064_v9 }
 0x2bd   :  { %v1110_v13 = vsel %vm401_vm4, %v1101_v27, %v1103_v10  ;;  %2193 = vmatpush1.bf16.msra.mxu0 %v2192_v2  ;;  %v2198_v20 = vpack.c.bf16 %v1070_v11, %v1029_v1 }
 0x2be   :  { %1373 = vmatprep.subr.mxu0 %v1273_v49 }
 0x2bf   :  { %v1105_v15 = vpop.permute.xlu0 %1104 }
 0x2c0   :  { %v1144_v16 = vpop.permute.xlu1 %1143  ;;  %v1111_v17 = vsel %vm401_vm4, %v1103_v10, %v1105_v15 }
 0x2c1   :  { %v1151_v18 = vsel %vm443_vm5, %v1142_v31, %v1144_v16  ;;  %1374 = vmatpush1.msra.mxu0 %v1272_v40 }
 0x2c2   :  { %2121 = vmatmul.mubr.msk.f32.vlgmr.msra.gmra.mrb[6].mxu0 %vm646_vm9, %v2847_v61  ;;  %2195 = vmatprep.subr.bf16.mxu0 %v2194_v7  ;;  %v2204_v31 = vpack.c.bf16 %v1151_v18, %v1110_v13 }
 0x2c3   :  { %v1146_v21 = vpop.permute.xlu0 %1145  ;;  %2197 = vmatpush1.bf16.msra.mxu0 %v2196_v19  ;;  %1427 = vmatprep.mubr.f32.mxu0 %v2474_v5  ;;  %v33_v19 = vld [vmem:[#allocation5 + $0x91] ss:$8 sm:$0xf] }
 0x2c4   :  { %v1185_v22 = vpop.permute.xlu1 %1184  ;;  %v1152_v23 = vsel %vm443_vm5, %v1144_v16, %v1146_v21  ;;  %2199 = vmatprep.subr.bf16.mxu0 %v2198_v20  ;;  %v34_v20 = vld [vmem:[#allocation5 + $0x91] ss:$8 sm:$0x30] }
 0x2c5   :  { %v1192_v55 = vsel %vm485_vm6, %v1183_v35, %v1185_v22  ;;  %v2202_v27 = vpack.c.bf16 %v1152_v23, %v1111_v17 }
 0x2c6   :  { %2122 = vmatmul.mubr.msk.f32.gmra.mrb[8].mxu0 %vm646_vm9, %v2845_v4 }
 0x2c7   :  { %v1187_v53 = vpop.permute.xlu0 %1186  ;;  %2201 = vmatpush1.bf16.msra.mxu0 %v2200_v26  ;;  %1498 = vmatprep.mubr.f32.mxu0 %v2474_v5 }
 0x2c8   :  { %v1226_v28 = vpop.permute.xlu1 %1225  ;;  %v1193_v29 = vsel %vm485_vm6, %v1185_v22, %v1187_v53  ;;  %2203 = vmatprep.subr.bf16.mxu0 %v2202_v27 }
 0x2c9   :  { %v1233_v30 = vsel %vm527_vm7, %v2864_v41, %v1226_v28 }
 0x2ca   :  { %v2208_v39 = vpack.c.bf16 %v1233_v30, %v1192_v55 }
 0x2cb   :  { %v1228_v32 = vpop.permute.xlu0 %1227  ;;  %2205 = vmatpush1.bf16.msra.mxu0 %v2204_v31 }
 0x2cc   :  { %v1025_v33 = vpop.permute.xlu1 %1024  ;;  %v1234_v34 = vsel %vm527_vm7, %v1226_v28, %v1228_v32 }
 0x2cd   :  { %v1030_v35 = vsel %vm317_vm2, %v1023_v62, %v1025_v33  ;;  %1042 = vst.msk [vmem:[#allocation3 + $0x88] sm:$0xff] %vm249_vm0, %v1025_v33  ;;  %v2206_v38 = vpack.c.bf16 %v1234_v34, %v1193_v29 }
 0x2cf   :  { %v984_v40 = vpop.permute.xlu0 %983  ;;  %2207 = vmatprep.subr.bf16.mxu0 %v2206_v38 }
 0x2d0   :  { %v1107_v42 = vpop.permute.xlu1 %1106  ;;  %v989_v43 = vsel %vm275_vm1, %v2876_v56, %v984_v40  ;;  %1001 = vst.msk [vmem:[#allocation3 + $0x58] sm:$0xff] %vm249_vm0, %v984_v40  ;;  %2209 = vmatpush1.bf16.msra.mxu0 %v2208_v39 }
 0x2d1   :  { %v1112_v41 = vsel %vm401_vm4, %v1105_v15, %v1107_v42  ;;  %1124 = vst.msk [vmem:[#allocation3 + $0xe8] sm:$0xff] %vm249_vm0, %v1107_v42  ;;  %v2212_v60 = vpack.c.bf16 %v989_v43, %v2803_v57 }
 0x2d3   :  { %v1066_v44 = vpop.permute.xlu0 %1065 }
 0x2d4   :  { %v1189_v45 = vpop.permute.xlu1 %1188  ;;  %v1071_v47 = vsel %vm359_vm3, %v1064_v9, %v1066_v44  ;;  %1083 = vst.msk [vmem:[#allocation3 + $0xb8] sm:$0xff] %vm249_vm0, %v1066_v44  ;;  %v1306_v62 = vld [vmem:[#allocation3 + $0x88] sm:$0xff] }
 0x2d5   :  { %v1194_v48 = vsel %vm485_vm6, %v1187_v53, %v1189_v45  ;;  %1206 = vst.msk [vmem:[#allocation3 + $0x148] sm:$0xff] %vm249_vm0, %v1189_v45  ;;  %v2216_v8 = vpack.c.bf16 %v1071_v47, %v1030_v35 }
 0x2d7   :  { %v1148_v49 = vpop.permute.xlu0 %1147  ;;  %v1300_v54 = vld [vmem:[#allocation3 + $0x58] sm:$0xff] }
 0x2d8   :  { %v1267_v56 = vpop.permute.xlu1 %1266  ;;  %v1153_v58 = vsel %vm443_vm5, %v1146_v21, %v1148_v49  ;;  %1165 = vst.msk [vmem:[#allocation3 + $0x118] sm:$0xff] %vm249_vm0, %v1148_v49  ;;  %v2210_v59 = vpack.c.bf16 %v1300_v54, %v1294_v52  ;;  %v35_v21 = vor.u32 %v34_v20, %v33_v19 }
 0x2d9   :  { %v1274_v50 = vsel %vm569_vm8, %v2870_v46, %v1267_v56  ;;  %v1318_v46 = vld [vmem:[#allocation3 + $0xe8] sm:$0xff]  ;;  %v2220_v13 = vpack.c.bf16 %v1153_v58, %v1112_v41 }
 0x2da   :  { %2211 = vmatprep.subr.bf16.mxu1 %v2210_v59  ;;  %v1604_v26 = vrot.slane %v35_v21, %v2712_v12  ;;  %v1608_v28 = vrot.slane %v35_v21, %v2715_v14  ;;  %v1612_v45 = vrot.slane %v35_v21, %v2722_v24  ;;  %v1616_v49 = vrot.slane %v35_v21, %v2725_v25 }
 0x2db   :  { %v1230_v51 = vpop.permute.xlu0 %1229  ;;  %2213 = vmatpush1.bf16.msra.mxu1 %v2212_v60  ;;  %v1312_v63 = vld [vmem:[#allocation3 + $0xb8] sm:$0xff] }
 0x2dc   :  { %v1271_v0 = vpop.permute.xlu1 %1270  ;;  %v1235_v1 = vsel %vm527_vm7, %v1228_v32, %v1230_v51  ;;  %1247 = vst.msk [vmem:[#allocation3 + $0x178] sm:$0xff] %vm249_vm0, %v1230_v51  ;;  %v2214_v6 = vpack.c.bf16 %v1312_v63, %v1306_v62  ;;  %v1330_v15 = vld [vmem:[#allocation3 + $0x148] sm:$0xff] }
 0x2dd   :  { %1288 = vst.msk [vmem:[#allocation3 + $0x1a8] sm:$0xff] %vm249_vm0, %v1271_v0  ;;  %v2224_v7 = vpack.c.bf16 %v1235_v1, %v1194_v48  ;;  %vm1747_vm0 = vcmask 130048  }
 0x2de   :  { %2215 = vmatprep.subr.bf16.mxu1 %v2214_v6 }
 0x2df   :  { %v1269_v9 = vpop.permute.xlu0 %1268  ;;  %2217 = vmatpush1.bf16.msra.mxu1 %v2216_v8  ;;  %v1324_v2 = vld [vmem:[#allocation3 + $0x118] sm:$0xff] }
 0x2e0   :  { %v1275_v57 = vsel %vm569_vm8, %v1267_v56, %v1269_v9  ;;  %v1276_v10 = vsel %vm569_vm8, %v1269_v9, %v1271_v0  ;;  %v2218_v11 = vpack.c.bf16 %v1324_v2, %v1318_v46  ;;  %v1620_v9 = vrot.slane %v35_v21, %v2732_v36 }
 0x2e1   :  { %1450 = vmatprep.subr.mxu0 %v1275_v57  ;;  %v1624_v57 = vrot.slane %v35_v21, %v2735_v37 }
 0x2e2   :  { %2219 = vmatprep.subr.bf16.mxu1 %v2218_v11  ;;  %1451 = vmatpush1.msra.mxu0 %v1274_v50 }
 0x2e3   :  { %2221 = vmatpush1.bf16.msra.mxu1 %v2220_v13  ;;  %v1336_v16 = vld [vmem:[#allocation3 + $0x178] sm:$0xff]  ;;  %2123 = vmatmul.mubr.msk.f32.vlgmr.msra.gmra.mrb[10].mxu0 %vm646_vm9, %v2847_v61 }
 0x2e4   :  { %v2222_v17 = vpack.c.bf16 %v1336_v16, %v1330_v15  ;;  %1504 = vmatprep.mubr.f32.mxu0 %v2474_v5  ;;  %v1342_v18 = vld [vmem:[#allocation3 + $0x1a8] sm:$0xff] }
 0x2e6   :  { %2223 = vmatprep.subr.bf16.mxu1 %v2222_v17 }
 0x2e7   :  { %2225 = vmatpush1.bf16.msra.mxu1 %v2224_v7  ;;  %2124 = vmatmul.mubr.msk.f32.gmra.mrb[12].mxu0 %vm646_vm9, %v2845_v4 }
 0x2e8   :  { %1527 = vmatprep.subr.mxu1 %v1342_v18 }
 0x2eb   :  { %1528 = vmatpush1.msra.mxu1 %v1276_v10 }
 0x2ec   :  { %2125 = vmatmul.mubr.msk.f32.vlgmr.msra.gmra.mrb[0].mxu1 %vm646_vm9, %v2847_v61 }
 0x2ed   :  { %1581 = vmatprep.mubr.f32.mxu1 %v2474_v5  ;;  %v1351_v61 = vpop.permute.xlu1 %1350 }
 0x2f0   :  { %2126 = vmatmul.mubr.msk.f32.gmra.mrb[2].mxu1 %vm646_vm9, %v2845_v4  ;;  %v1346_v22 = vpop.permute.xlu0 %1345 }
 0x2f1   :  { %1815 = vmatprep.mubr.f32.mxu1 %v2474_v5 }
 0x395   :  { %v1423_v23 = vpop.f32.mrb[6].mxu0 }
 0x396   :  { %v1424_v55 = vadd.f32 %v1423_v23, %v1346_v22  ;;  %v1425_v27 = vpop.f32.mrb[7].mxu0 }
 0x397   :  { %v1426_v53 = vadd.f32 %v1425_v27, %v1346_v22 }
 0x398   :  { %v1588_v29 = vmax.f32 %v1424_v55, 0.0 }
 0x399   :  { %v1589_v30 = vmax.f32 %v1426_v53, 0.0  ;;  %v1429_v31 = vpop.f32.mrb[8].mxu0 }
 0x39a   :  { %v1631_v32 = vmul.f32 %v1604_v26, %v1588_v29  ;;  %v1431_v4 = vpop.f32.mrb[9].mxu0  ;;  %v1430_v33 = vadd.f32 %v1429_v31, %v1351_v61 }
 0x39b   :  { %v1632_v5 = vmul.f32 %v1608_v28, %v1589_v30  ;;  %v1432_v34 = vadd.f32 %v1431_v4, %v1351_v61 }
 0x39c   :  { %v1594_v35 = vmax.f32 %v1430_v33, 0.0 }
 0x39d   :  { %v1643_v38 = vadd.f32 %v1632_v5, %v1631_v32  ;;  %v1595_v39 = vmax.f32 %v1432_v34, 0.0 }
 0x39e   :  { %v1637_v40 = vmul.f32 %v1604_v26, %v1594_v35 }
 0x39f   :  { %v1638_v42 = vmul.f32 %v1608_v28, %v1595_v39 }
 0x3a1   :  { %v1649_v43 = vadd.f32 %v1638_v42, %v1637_v40 }
 0x3b6   :  { %v1500_v41 = vpop.f32.mrb[10].mxu0 }
 0x3b7   :  { %v1501_v44 = vadd.f32 %v1500_v41, %v1346_v22  ;;  %v1502_v47 = vpop.f32.mrb[11].mxu0 }
 0x3b8   :  { %v1503_v48 = vadd.f32 %v1502_v47, %v1346_v22  ;;  %v37_v47 = vld [vmem:[#allocation5 + $0xc8] sm:$0xff] }
 0x3b9   :  { %v1590_v52 = vmax.f32 %v1501_v44, 0.0 }
 0x3ba   :  { %v1591_v54 = vmax.f32 %v1503_v48, 0.0  ;;  %v1506_v56 = vpop.f32.mrb[12].mxu0  ;;  %v39_v48 = vld [vmem:[#allocation5 + $0xf8] sm:$0xff] }
 0x3bb   :  { %v1633_v58 = vmul.f32 %v1612_v45, %v1590_v52  ;;  %v1507_v59 = vadd.f32 %v1506_v56, %v1351_v61  ;;  %v1508_v50 = vpop.f32.mrb[13].mxu0  ;;  %v2226_v52 = vpack.c.bf16 %v39_v48, %v37_v47  ;;  %v129_v47 = vld [vmem:[#allocation5 + $0x408] sm:$0xff]  ;;  %v135_v48 = vld [vmem:[#allocation5 + $0x438] sm:$0xff] }
 0x3bc   :  { %v1634_v60 = vmul.f32 %v1616_v49, %v1591_v54  ;;  %v1509_v6 = vadd.f32 %v1508_v50, %v1351_v61  ;;  %v38_v54 = vld [vmem:[#allocation5 + $0xf0] sm:$0xff] }
 0x3bd   :  { %v1596_v51 = vmax.f32 %v1507_v59, 0.0  ;;  %1662 = vrot.lane.b32.xlu0 %v1633_v58, %s2478_s14  ;;  %v1645_v62 = vsel %vm1644_vm13, %v1633_v58, 0.0  ;;  %2227 = vmatprep.subr.bf16.mxu1 %v2226_v52  ;;  %v2322_v52 = vpack.c.bf16 %v135_v48, %v129_v47  ;;  %v67_v47 = vld [vmem:[#allocation5 + $0x218] sm:$0xff]  ;;  %v73_v48 = vld [vmem:[#allocation5 + $0x248] sm:$0xff] }
 0x3be   :  { %1664 = vrot.lane.b32.xlu1 %v1634_v60, %s2478_s14  ;;  %v1646_v63 = vadd.f32 %v1645_v62, %v1643_v38  ;;  %v1597_v17 = vmax.f32 %v1509_v6, 0.0  ;;  %v49_v62 = vld [vmem:[#allocation5 + $0x188] sm:$0xff]  ;;  %v51_v6 = vld [vmem:[#allocation5 + $0x198] sm:$0xff] }
 0x3bf   :  { %v1577_v0 = vpop.f32.mrb[0].mxu1  ;;  %v1639_v1 = vmul.f32 %v1612_v45, %v1596_v51  ;;  %v43_v51 = vld [vmem:[#allocation5 + $0x158] sm:$0xff] }
 0x3c0   :  { %v1578_v8 = vadd.f32 %v1577_v0, %v1346_v22  ;;  %v1579_v46 = vpop.f32.mrb[1].mxu1  ;;  %v1640_v55 = vmul.f32 %v1616_v49, %v1597_v17  ;;  %v36_v49 = vld [vmem:[#allocation5 + $0xc0] sm:$0xff]  ;;  %v2230_v0 = vpack.c.bf16 %v49_v62, %v43_v51  ;;  %v146_v51 = vld [vmem:[#allocation5 + $0x490] sm:$0xff] }
 0x3c1   :  { %v1580_v2 = vadd.f32 %v1579_v46, %v1346_v22  ;;  %v1650_v10 = vsel %vm1644_vm13, %v1639_v1, 0.0  ;;  %v2228_v56 = vpack.c.bf16 %v38_v54, %v36_v49  ;;  %v44_v46 = vld [vmem:[#allocation5 + $0x160] sm:$0xff]  ;;  %v134_v54 = vld [vmem:[#allocation5 + $0x430] sm:$0xff] }
 0x3c2   :  { %v1592_v11 = vmax.f32 %v1578_v8, 0.0  ;;  %v1651_v13 = vadd.f32 %v1650_v10, %v1649_v43  ;;  %v57_v10 = vld [vmem:[#allocation5 + $0x1c8] sm:$0xff]  ;;  %v128_v49 = vld [vmem:[#allocation5 + $0x400] sm:$0xff] }
 0x3c3   :  { %v1593_v15 = vmax.f32 %v1580_v2, 0.0  ;;  %v1583_v16 = vpop.f32.mrb[2].mxu1  ;;  %2229 = vmatpush1.bf16.msra.mxu1 %v2228_v56  ;;  %v50_v2 = vld [vmem:[#allocation5 + $0x190] sm:$0xff]  ;;  %v2324_v56 = vpack.c.bf16 %v134_v54, %v128_v49 }
 0x3c4   :  { %v1635_v7 = vmul.f32 %v1620_v9, %v1592_v11  ;;  %v1584_v18 = vadd.f32 %v1583_v16, %v1351_v61  ;;  %v1585_v19 = vpop.f32.mrb[3].mxu1  ;;  %2231 = vmatprep.subr.bf16.mxu1 %v2230_v0  ;;  %v63_v11 = vld [vmem:[#allocation5 + $0x1f8] sm:$0xff]  ;;  %v62_v16 = vld [vmem:[#allocation5 + $0x1f0] sm:$0xff] }
 0x3c5   :  { %v1636_v20 = vmul.f32 %v1624_v57, %v1593_v15  ;;  %v1586_v23 = vadd.f32 %v1585_v19, %v1351_v61  ;;  %v2298_v15 = vpack.c.bf16 %v63_v11, %v57_v10  ;;  %v68_v19 = vld [vmem:[#allocation5 + $0x220] sm:$0xff]  ;;  %v159_v0 = vld [vmem:[#allocation5 + $0x4f8] sm:$0xff]  ;;  %v170_v11 = vld [vmem:[#allocation5 + $0x550] sm:$0xff] }
 0x3c6   :  { %1666 = vrot.lane.b32.xlu0 %v1635_v7, %s2478_s14  ;;  %v1598_v22 = vmax.f32 %v1584_v18, 0.0  ;;  %v69_v7 = vld [vmem:[#allocation5 + $0x228] sm:$0xff]  ;;  %v75_v18 = vld [vmem:[#allocation5 + $0x258] sm:$0xff]  ;;  %v66_v54 = vld [vmem:[#allocation5 + $0x210] sm:$0xff] }
 0x3c7   :  { %1668 = vrot.lane.b32.xlu1 %v1636_v20, %s2478_s14  ;;  %v1599_v26 = vmax.f32 %v1586_v23, 0.0  ;;  %v2302_v20 = vpack.c.bf16 %v75_v18, %v69_v7  ;;  %v74_v23 = vld [vmem:[#allocation5 + $0x250] sm:$0xff] }
 0x3c8   :  { %v1641_v21 = vmul.f32 %v1620_v9, %v1598_v22  ;;  %v81_v22 = vld [vmem:[#allocation5 + $0x288] sm:$0xff]  ;;  %v182_v18 = vld [vmem:[#allocation5 + $0x5b0] sm:$0xff] }
 0x3c9   :  { %v1642_v27 = vmul.f32 %v1624_v57, %v1599_v26  ;;  %v2296_v57 = vpack.c.bf16 %v50_v2, %v44_v46  ;;  %v87_v26 = vld [vmem:[#allocation5 + $0x2b8] sm:$0xff]  ;;  %v165_v46 = vld [vmem:[#allocation5 + $0x528] sm:$0xff] }
 0x3ca   :  { %1670 = vrot.lane.b32.xlu0 %v1639_v1, %s2478_s14  ;;  %v45_v1 = vld [vmem:[#allocation5 + $0x168] sm:$0xff]  ;;  %v171_v2 = vld [vmem:[#allocation5 + $0x558] sm:$0xff] }
 0x3cb   :  { %1672 = vrot.lane.b32.xlu1 %v1640_v55, %s2478_s14  ;;  %v2294_v9 = vpack.c.bf16 %v51_v6, %v45_v1  ;;  %v2304_v55 = vpack.c.bf16 %v74_v23, %v68_v19  ;;  %v152_v1 = vld [vmem:[#allocation5 + $0x4c0] sm:$0xff]  ;;  %v2334_v10 = vpack.c.bf16 %v171_v2, %v165_v46  ;;  %v195_v23 = vld [vmem:[#allocation5 + $0x618] sm:$0xff]  ;;  %v109_v2 = vld [vmem:[#allocation5 + $0x368] sm:$0xff] }
 0x3cc   :  { %v103_v46 = vld [vmem:[#allocation5 + $0x338] sm:$0xff] }
 0x3cd   :  { %2295 = vmatprep.subr.bf16.mxu0 %v2294_v9 }
 0x3ce   :  { %1674 = vrot.lane.b32.xlu0 %v1641_v21, %s2478_s14  ;;  %2297 = vmatpush1.bf16.msra.mxu0 %v2296_v57  ;;  %v80_v21 = vld [vmem:[#allocation5 + $0x280] sm:$0xff] }
 0x3cf   :  { %1676 = vrot.lane.b32.xlu1 %v1642_v27, %s2478_s14  ;;  %2299 = vmatprep.subr.bf16.mxu0 %v2298_v15  ;;  %v2306_v27 = vpack.c.bf16 %v87_v26, %v81_v22  ;;  %v164_v57 = vld [vmem:[#allocation5 + $0x520] sm:$0xff]  ;;  %v177_v15 = vld [vmem:[#allocation5 + $0x588] sm:$0xff]  ;;  %v194_v26 = vld [vmem:[#allocation5 + $0x610] sm:$0xff] }
 0x3ed   :  { %1647 = vadd.xlane.f32.xlu0 %v1646_v63 }
 0x3f1   :  { %1652 = vadd.xlane.f32.xlu0 %v1651_v13  ;;  %v56_v13 = vld [vmem:[#allocation5 + $0x1c0] sm:$0xff] }
 0x3f2   :  { %v2300_v17 = vpack.c.bf16 %v62_v16, %v56_v13  ;;  %v2336_v13 = vpack.c.bf16 %v170_v11, %v164_v57  ;;  %v183_v16 = vld [vmem:[#allocation5 + $0x5b8] sm:$0xff]  ;;  %v102_v11 = vld [vmem:[#allocation5 + $0x330] sm:$0xff] }
 0x3f3   :  { %v2338_v7 = vpack.c.bf16 %v183_v16, %v177_v15  ;;  %v115_v15 = vld [vmem:[#allocation5 + $0x398] sm:$0xff]  ;;  %v121_v16 = vld [vmem:[#allocation5 + $0x3c8] sm:$0xff] }
 0x3f4   :  { %2301 = vmatpush1.bf16.msra.mxu0 %v2300_v17  ;;  %v176_v17 = vld [vmem:[#allocation5 + $0x580] sm:$0xff] }
 0x3f5   :  { %2303 = vmatprep.subr.bf16.mxu0 %v2302_v20  ;;  %v2340_v19 = vpack.c.bf16 %v182_v18, %v176_v17  ;;  %v189_v20 = vld [vmem:[#allocation5 + $0x5e8] sm:$0xff]  ;;  %v114_v18 = vld [vmem:[#allocation5 + $0x390] sm:$0xff] }
 0x3f6   :  { %v2342_v22 = vpack.c.bf16 %v195_v23, %v189_v20  ;;  %v127_v20 = vld [vmem:[#allocation5 + $0x3f8] sm:$0xff]  ;;  %v133_v23 = vld [vmem:[#allocation5 + $0x428] sm:$0xff] }
 0x3f8   :  { %2305 = vmatpush1.bf16.msra.mxu0 %v2304_v55  ;;  %v188_v55 = vld [vmem:[#allocation5 + $0x5e0] sm:$0xff] }
 0x3f9   :  { %2307 = vmatprep.subr.bf16.mxu0 %v2306_v27  ;;  %v201_v27 = vld [vmem:[#allocation5 + $0x648] sm:$0xff] }
 0x42f   :  { %v1663_v53 = vpop.permute.xlu0 %1662 }
 0x430   :  { %v1665_v28 = vpop.permute.xlu1 %1664 }
 0x431   :  { %v1679_v29 = vsel %vm1678_vm14, %v1663_v53, %v1665_v28  ;;  %v86_v53 = vld [vmem:[#allocation5 + $0x2b0] sm:$0xff] }
 0x438   :  { %v1667_v61 = vpop.permute.xlu0 %1666 }
 0x439   :  { %v1680_v30 = vsel %vm1678_vm14, %v1665_v28, %v1667_v61  ;;  %v1669_v31 = vpop.permute.xlu1 %1668  ;;  %v2308_v28 = vpack.c.bf16 %v86_v53, %v80_v21  ;;  %v2344_v21 = vpack.c.bf16 %v194_v26, %v188_v55  ;;  %v207_v53 = vld [vmem:[#allocation5 + $0x678] sm:$0xff]  ;;  %v126_v26 = vld [vmem:[#allocation5 + $0x3f0] sm:$0xff] }
 0x43a   :  { %v1691_v32 = vadd.f32 %v1680_v30, %v1679_v29  ;;  %v1681_v4 = vsel %vm1678_vm14, %v1667_v61, %v1669_v31  ;;  %v93_v61 = vld [vmem:[#allocation5 + $0x2e8] sm:$0xff]  ;;  %v99_v29 = vld [vmem:[#allocation5 + $0x318] sm:$0xff]  ;;  %v92_v30 = vld [vmem:[#allocation5 + $0x2e0] sm:$0xff] }
 0x43b   :  { %v1692_v33 = vsel %vm1644_vm13, %v1681_v4, 0.0  ;;  %2309 = vmatpush1.bf16.msra.mxu0 %v2308_v28  ;;  %v2310_v31 = vpack.c.bf16 %v99_v29, %v93_v61  ;;  %v200_v28 = vld [vmem:[#allocation5 + $0x640] sm:$0xff]  ;;  %v2346_v61 = vpack.c.bf16 %v207_v53, %v201_v27  ;;  %v206_v29 = vld [vmem:[#allocation5 + $0x670] sm:$0xff]  ;;  %v139_v27 = vld [vmem:[#allocation5 + $0x458] sm:$0xff] }
 0x43c   :  { %v1693_v5 = vadd.f32 %v1692_v33, %v1691_v32  ;;  %v1671_v34 = vpop.permute.xlu0 %1670  ;;  %v98_v32 = vld [vmem:[#allocation5 + $0x310] sm:$0xff]  ;;  %v105_v33 = vld [vmem:[#allocation5 + $0x348] sm:$0xff] }
 0x43d   :  { %v1673_v35 = vpop.permute.xlu1 %1672  ;;  %v2312_v4 = vpack.c.bf16 %v98_v32, %v92_v30  ;;  %2311 = vmatprep.subr.bf16.mxu0 %v2310_v31  ;;  %v2348_v30 = vpack.c.bf16 %v206_v29, %v200_v28  ;;  %v213_v31 = vld [vmem:[#allocation5 + $0x6a8] sm:$0xff]  ;;  %v219_v32 = vld [vmem:[#allocation5 + $0x6d8] sm:$0xff]  ;;  %v138_v29 = vld [vmem:[#allocation5 + $0x450] sm:$0xff] }
 0x43e   :  { %1694 = vadd.xlane.f32.xlu1 %v1693_v5  ;;  %v1682_v39 = vsel %vm1678_vm14, %v1671_v34, %v1673_v35  ;;  %v111_v5 = vld [vmem:[#allocation5 + $0x378] sm:$0xff]  ;;  %v104_v34 = vld [vmem:[#allocation5 + $0x340] sm:$0xff]  ;;  %v145_v53 = vld [vmem:[#allocation5 + $0x488] sm:$0xff] }
 0x43f   :  { %2313 = vmatpush1.bf16.msra.mxu0 %v2312_v4  ;;  %v212_v4 = vld [vmem:[#allocation5 + $0x6a0] sm:$0xff] }
 0x440   :  { %v1675_v38 = vpop.permute.xlu0 %1674 }
 0x441   :  { %v1683_v40 = vsel %vm1678_vm14, %v1673_v35, %v1675_v38  ;;  %v1677_v42 = vpop.permute.xlu1 %1676  ;;  %v2314_v35 = vpack.c.bf16 %v111_v5, %v105_v33  ;;  %v2350_v33 = vpack.c.bf16 %v219_v32, %v213_v31  ;;  %v218_v5 = vld [vmem:[#allocation5 + $0x6d0] sm:$0xff]  ;;  %v151_v31 = vld [vmem:[#allocation5 + $0x4b8] sm:$0xff]  ;;  %v157_v32 = vld [vmem:[#allocation5 + $0x4e8] sm:$0xff] }
 0x442   :  { %v1696_v43 = vadd.f32 %v1683_v40, %v1682_v39  ;;  %v1684_v41 = vsel %vm1678_vm14, %v1675_v38, %v1677_v42  ;;  %v110_v38 = vld [vmem:[#allocation5 + $0x370] sm:$0xff]  ;;  %v117_v40 = vld [vmem:[#allocation5 + $0x3a8] sm:$0xff]  ;;  %v123_v42 = vld [vmem:[#allocation5 + $0x3d8] sm:$0xff] }
 0x443   :  { %v1697_v44 = vsel %vm1644_vm13, %v1684_v41, 0.0  ;;  %v2316_v39 = vpack.c.bf16 %v110_v38, %v104_v34  ;;  %2315 = vmatprep.subr.bf16.mxu0 %v2314_v35  ;;  %v2318_v41 = vpack.c.bf16 %v123_v42, %v117_v40  ;;  %v2352_v34 = vpack.c.bf16 %v218_v5, %v212_v4  ;;  %v42_v35 = vld [vmem:[#allocation5 + $0x150] sm:$0xff]  ;;  %v48_v38 = vld [vmem:[#allocation5 + $0x180] sm:$0xff]  ;;  %v61_v40 = vld [vmem:[#allocation5 + $0x1e8] sm:$0xff] }
 0x444   :  { %v1698_v45 = vadd.f32 %v1697_v44, %v1696_v43  ;;  %v116_v43 = vld [vmem:[#allocation5 + $0x3a0] sm:$0xff]  ;;  %v122_v44 = vld [vmem:[#allocation5 + $0x3d0] sm:$0xff]  ;;  %v2232_v42 = vpack.c.bf16 %v48_v38, %v42_v35  ;;  %v163_v35 = vld [vmem:[#allocation5 + $0x518] sm:$0xff] }
 0x445   :  { %2317 = vmatpush1.bf16.msra.mxu0 %v2316_v39  ;;  %v55_v39 = vld [vmem:[#allocation5 + $0x1b8] sm:$0xff]  ;;  %v150_v5 = vld [vmem:[#allocation5 + $0x4b0] sm:$0xff]  ;;  %v169_v38 = vld [vmem:[#allocation5 + $0x548] sm:$0xff] }
 0x446   :  { %1699 = vadd.xlane.f32.xlu0 %v1698_v45  ;;  %v2320_v45 = vpack.c.bf16 %v122_v44, %v116_v43  ;;  %2319 = vmatprep.subr.bf16.mxu0 %v2318_v41  ;;  %v2234_v43 = vpack.c.bf16 %v61_v40, %v55_v39  ;;  %v54_v41 = vld [vmem:[#allocation5 + $0x1b0] sm:$0xff]  ;;  %v60_v44 = vld [vmem:[#allocation5 + $0x1e0] sm:$0xff]  ;;  %v2270_v40 = vpack.c.bf16 %v169_v38, %v163_v35 }
 0x447   :  { %v2236_v49 = vpack.c.bf16 %v60_v44, %v54_v41  ;;  %v175_v41 = vld [vmem:[#allocation5 + $0x578] sm:$0xff]  ;;  %v181_v44 = vld [vmem:[#allocation5 + $0x5a8] sm:$0xff] }
 0x449   :  { %2321 = vmatpush1.bf16.msra.mxu0 %v2320_v45 }
 0x44a   :  { %2323 = vmatprep.subr.bf16.mxu0 %v2322_v52  ;;  %v2238_v52 = vpack.c.bf16 %v73_v48, %v67_v47  ;;  %v2274_v47 = vpack.c.bf16 %v181_v44, %v175_v41  ;;  %v174_v48 = vld [vmem:[#allocation5 + $0x570] sm:$0xff]  ;;  %v77_v41 = vld [vmem:[#allocation5 + $0x268] sm:$0xff] }
 0x44d   :  { %2325 = vmatpush1.bf16.msra.mxu0 %v2324_v56  ;;  %v72_v56 = vld [vmem:[#allocation5 + $0x240] sm:$0xff] }
 0x47a   :  { %v1648_v58 = vpop.xlane.xlu0 %1647 }
 0x47e   :  { %v1653_v60 = vpop.xlane.xlu0 %1652 }
 0x4cb   :  { %v1695_v59 = vpop.xlane.xlu1 %1694 }
 0x4cc   :  { %v1702_v50 = vsel %vm1701_vm15, %v1648_v58, %v1695_v59  ;;  %v141_v58 = vld [vmem:[#allocation5 + $0x468] sm:$0xff]  ;;  %v147_v59 = vld [vmem:[#allocation5 + $0x498] sm:$0xff] }
 0x4cd   :  { %1704 = vxpose.xlu1.b32.start [1/2] (short) (narrow) %v1702_v50, 8  ;;  %v140_v50 = vld [vmem:[#allocation5 + $0x460] sm:$0xff] }
 0x4ce   :  { %v2328_v62 = vpack.c.bf16 %v146_v51, %v140_v50  ;;  %v2240_v50 = vpack.c.bf16 %v72_v56, %v66_v54  ;;  %v78_v51 = vld [vmem:[#allocation5 + $0x270] sm:$0xff]  ;;  %v193_v54 = vld [vmem:[#allocation5 + $0x608] sm:$0xff] }
 0x4d3   :  { %v1700_v63 = vpop.xlane.xlu0 %1699 }
 0x4d4   :  { %v1703_v8 = vsel %vm1701_vm15, %v1653_v60, %v1700_v63  ;;  %v2326_v60 = vpack.c.bf16 %v147_v59, %v141_v58  ;;  %v153_v63 = vld [vmem:[#allocation5 + $0x4c8] sm:$0xff]  ;;  %v79_v58 = vld [vmem:[#allocation5 + $0x278] sm:$0xff] }
 0x4d5   :  { %1705 = vxpose.xlu1.b32.end [2/2] (short) (narrow) %v1703_v8, 8  ;;  %v2330_v6 = vpack.c.bf16 %v159_v0, %v153_v63  ;;  %v158_v8 = vld [vmem:[#allocation5 + $0x4f0] sm:$0xff]  ;;  %v85_v59 = vld [vmem:[#allocation5 + $0x2a8] sm:$0xff]  ;;  %v91_v63 = vld [vmem:[#allocation5 + $0x2d8] sm:$0xff] }
 0x4d6   :  { %2327 = vmatprep.subr.bf16.mxu0 %v2326_v60  ;;  %v2332_v9 = vpack.c.bf16 %v158_v8, %v152_v1  ;;  %v2242_v60 = vpack.c.bf16 %v85_v59, %v79_v58  ;;  %v97_v0 = vld [vmem:[#allocation5 + $0x308] sm:$0xff]  ;;  %v90_v8 = vld [vmem:[#allocation5 + $0x2d0] sm:$0xff] }
 0x4d7   :  { %2329 = vmatpush1.bf16.msra.mxu0 %v2328_v62  ;;  %v84_v62 = vld [vmem:[#allocation5 + $0x2a0] sm:$0xff]  ;;  %v186_v59 = vld [vmem:[#allocation5 + $0x5d0] sm:$0xff] }
 0x4d8   :  { %2331 = vmatprep.subr.bf16.mxu0 %v2330_v6  ;;  %v2244_v1 = vpack.c.bf16 %v84_v62, %v78_v51  ;;  %v2246_v6 = vpack.c.bf16 %v97_v0, %v91_v63  ;;  %v205_v51 = vld [vmem:[#allocation5 + $0x668] sm:$0xff]  ;;  %v198_v0 = vld [vmem:[#allocation5 + $0x630] sm:$0xff] }
 0x4db   :  { %2333 = vmatpush1.bf16.msra.mxu0 %v2332_v9  ;;  %v96_v9 = vld [vmem:[#allocation5 + $0x300] sm:$0xff] }
 0x4dc   :  { %2335 = vmatprep.subr.bf16.mxu0 %v2334_v10  ;;  %v2248_v57 = vpack.c.bf16 %v96_v9, %v90_v8  ;;  %v2250_v10 = vpack.c.bf16 %v109_v2, %v103_v46  ;;  %v217_v8 = vld [vmem:[#allocation5 + $0x6c8] sm:$0xff]  ;;  %v210_v2 = vld [vmem:[#allocation5 + $0x690] sm:$0xff] }
 0x4df   :  { %2337 = vmatpush1.bf16.msra.mxu0 %v2336_v13  ;;  %v108_v13 = vld [vmem:[#allocation5 + $0x360] sm:$0xff] }
 0x4e0   :  { %2339 = vmatprep.subr.bf16.mxu0 %v2338_v7  ;;  %v2252_v17 = vpack.c.bf16 %v108_v13, %v102_v11  ;;  %v2254_v7 = vpack.c.bf16 %v121_v16, %v115_v15  ;;  %v223_v11 = vld [vmem:[#allocation5 + $0x6f8] sm:$0xff]  ;;  %v229_v13 = vld [vmem:[#allocation5 + $0x728] sm:$0xff]  ;;  %v222_v16 = vld [vmem:[#allocation5 + $0x6f0] sm:$0xff] }
 0x4e1   :  { %v2290_v15 = vpack.c.bf16 %v229_v13, %v223_v11 }
 0x4e3   :  { %2341 = vmatpush1.bf16.msra.mxu0 %v2340_v19  ;;  %v120_v19 = vld [vmem:[#allocation5 + $0x3c0] sm:$0xff] }
 0x4e4   :  { %2343 = vmatprep.subr.bf16.mxu0 %v2342_v22  ;;  %v2256_v55 = vpack.c.bf16 %v120_v19, %v114_v18  ;;  %v2258_v22 = vpack.c.bf16 %v133_v23, %v127_v20  ;;  %v231_v19 = vld [vmem:[#allocation5 + $0x738] sm:$0xff]  ;;  %v224_v20 = vld [vmem:[#allocation5 + $0x700] sm:$0xff]  ;;  %v230_v23 = vld [vmem:[#allocation5 + $0x730] sm:$0xff] }
 0x4e7   :  { %2345 = vmatpush1.bf16.msra.mxu0 %v2344_v21  ;;  %v132_v21 = vld [vmem:[#allocation5 + $0x420] sm:$0xff] }
 0x4e8   :  { %2347 = vmatprep.subr.bf16.mxu0 %v2346_v61  ;;  %v2260_v28 = vpack.c.bf16 %v132_v21, %v126_v26  ;;  %v2262_v61 = vpack.c.bf16 %v145_v53, %v139_v27  ;;  %v47_v26 = vld [vmem:[#allocation5 + $0x178] sm:$0xff]  ;;  %v53_v21 = vld [vmem:[#allocation5 + $0x1a8] sm:$0xff] }
 0x4e9   :  { %v2358_v27 = vpack.c.bf16 %v53_v21, %v47_v26  ;;  %v41_v53 = vld [vmem:[#allocation5 + $0x120] ss:$8 sm:$0x3] }
 0x4eb   :  { %2349 = vmatpush1.bf16.msra.mxu0 %v2348_v30  ;;  %v144_v30 = vld [vmem:[#allocation5 + $0x480] sm:$0xff] }
 0x4ec   :  { %2351 = vmatprep.subr.bf16.mxu0 %v2350_v33  ;;  %v2264_v4 = vpack.c.bf16 %v144_v30, %v138_v29  ;;  %v2266_v33 = vpack.c.bf16 %v157_v32, %v151_v31  ;;  %v46_v29 = vld [vmem:[#allocation5 + $0x170] sm:$0xff]  ;;  %v52_v30 = vld [vmem:[#allocation5 + $0x1a0] sm:$0xff]  ;;  %v59_v32 = vld [vmem:[#allocation5 + $0x1d8] sm:$0xff] }
 0x4ed   :  { %v2360_v35 = vpack.c.bf16 %v52_v30, %v46_v29 }
 0x4ef   :  { %2353 = vmatpush1.bf16.msra.mxu0 %v2352_v34  ;;  %v156_v34 = vld [vmem:[#allocation5 + $0x4e0] sm:$0xff] }
 0x4f0   :  { %v2268_v39 = vpack.c.bf16 %v156_v34, %v150_v5 }
 0x551   :  { %v1720_v45 = vpop.trf.xlu1 }
 0x552   :  { %2127 = vmatmul.mubr.msk.f32.vlgmr.msra.gmra.mrb[4].mxu1 %vm1747_vm0, %v1720_v45 }
 0x553   :  { %2233 = vmatpush1.bf16.msra.mxu1 %v2232_v42  ;;  %v162_v42 = vld [vmem:[#allocation5 + $0x510] sm:$0xff] }
 0x554   :  { %2235 = vmatprep.subr.bf16.mxu1 %v2234_v43  ;;  %v168_v43 = vld [vmem:[#allocation5 + $0x540] sm:$0xff] }
 0x555   :  { %v2272_v45 = vpack.c.bf16 %v168_v43, %v162_v42  ;;  %v71_v43 = vld [vmem:[#allocation5 + $0x238] sm:$0xff] }
 0x557   :  { %2237 = vmatpush1.bf16.msra.mxu1 %v2236_v49  ;;  %v180_v49 = vld [vmem:[#allocation5 + $0x5a0] sm:$0xff] }
 0x558   :  { %2239 = vmatprep.subr.bf16.mxu1 %v2238_v52  ;;  %v187_v52 = vld [vmem:[#allocation5 + $0x5d8] sm:$0xff]  ;;  %v2276_v56 = vpack.c.bf16 %v180_v49, %v174_v48  ;;  %v76_v48 = vld [vmem:[#allocation5 + $0x260] sm:$0xff] }
 0x559   :  { %v2278_v58 = vpack.c.bf16 %v193_v54, %v187_v52  ;;  %v83_v49 = vld [vmem:[#allocation5 + $0x298] sm:$0xff]  ;;  %v89_v52 = vld [vmem:[#allocation5 + $0x2c8] sm:$0xff] }
 0x55b   :  { %2241 = vmatpush1.bf16.msra.mxu1 %v2240_v50  ;;  %v192_v50 = vld [vmem:[#allocation5 + $0x600] sm:$0xff] }
 0x55c   :  { %2243 = vmatprep.subr.bf16.mxu1 %v2242_v60  ;;  %v199_v60 = vld [vmem:[#allocation5 + $0x638] sm:$0xff]  ;;  %v2280_v62 = vpack.c.bf16 %v192_v50, %v186_v59  ;;  %v88_v59 = vld [vmem:[#allocation5 + $0x2c0] sm:$0xff] }
 0x55d   :  { %v2282_v63 = vpack.c.bf16 %v205_v51, %v199_v60  ;;  %v95_v50 = vld [vmem:[#allocation5 + $0x2f8] sm:$0xff]  ;;  %v101_v60 = vld [vmem:[#allocation5 + $0x328] sm:$0xff] }
 0x55f   :  { %2245 = vmatpush1.bf16.msra.mxu1 %v2244_v1  ;;  %v204_v1 = vld [vmem:[#allocation5 + $0x660] sm:$0xff] }
 0x560   :  { %2247 = vmatprep.subr.bf16.mxu1 %v2246_v6  ;;  %v211_v6 = vld [vmem:[#allocation5 + $0x698] sm:$0xff]  ;;  %v2284_v9 = vpack.c.bf16 %v204_v1, %v198_v0  ;;  %v100_v0 = vld [vmem:[#allocation5 + $0x320] sm:$0xff] }
 0x561   :  { %v2286_v46 = vpack.c.bf16 %v217_v8, %v211_v6  ;;  %v107_v1 = vld [vmem:[#allocation5 + $0x358] sm:$0xff]  ;;  %v113_v6 = vld [vmem:[#allocation5 + $0x388] sm:$0xff] }
 0x563   :  { %2249 = vmatpush1.bf16.msra.mxu1 %v2248_v57  ;;  %v216_v57 = vld [vmem:[#allocation5 + $0x6c0] sm:$0xff] }
 0x564   :  { %2251 = vmatprep.subr.bf16.mxu1 %v2250_v10  ;;  %v2288_v10 = vpack.c.bf16 %v216_v57, %v210_v2  ;;  %v112_v2 = vld [vmem:[#allocation5 + $0x380] sm:$0xff]  ;;  %v119_v57 = vld [vmem:[#allocation5 + $0x3b8] sm:$0xff] }
 0x567   :  { %2253 = vmatpush1.bf16.msra.mxu1 %v2252_v17  ;;  %v228_v17 = vld [vmem:[#allocation5 + $0x720] sm:$0xff] }
 0x568   :  { %2255 = vmatprep.subr.bf16.mxu1 %v2254_v7  ;;  %v225_v7 = vld [vmem:[#allocation5 + $0x708] sm:$0xff]  ;;  %v2292_v18 = vpack.c.bf16 %v228_v17, %v222_v16  ;;  %v124_v16 = vld [vmem:[#allocation5 + $0x3e0] sm:$0xff]  ;;  %v131_v17 = vld [vmem:[#allocation5 + $0x418] sm:$0xff] }
 0x56b   :  { %2257 = vmatpush1.bf16.msra.mxu1 %v2256_v55  ;;  %v2354_v55 = vpack.c.bf16 %v231_v19, %v225_v7  ;;  %v137_v7 = vld [vmem:[#allocation5 + $0x448] sm:$0xff] }
 0x56c   :  { %2259 = vmatprep.subr.bf16.mxu1 %v2258_v22  ;;  %v2356_v22 = vpack.c.bf16 %v230_v23, %v224_v20  ;;  %v2386_v19 = vpack.c.bf16 %v137_v7, %v131_v17  ;;  %v130_v20 = vld [vmem:[#allocation5 + $0x410] sm:$0xff]  ;;  %v136_v23 = vld [vmem:[#allocation5 + $0x440] sm:$0xff] }
 0x56d   :  { %2355 = vmatprep.subr.bf16.mxu0 %v2354_v55  ;;  %v143_v55 = vld [vmem:[#allocation5 + $0x478] sm:$0xff]  ;;  %v2388_v26 = vpack.c.bf16 %v136_v23, %v130_v20 }
 0x56e   :  { %2357 = vmatpush1.bf16.msra.mxu0 %v2356_v22  ;;  %v149_v22 = vld [vmem:[#allocation5 + $0x4a8] sm:$0xff]  ;;  %v236_v17 = vld [vmem:[#allocation5 + $0x750] ss:$8 sm:$0x30] }
 0x56f   :  { %2261 = vmatpush1.bf16.msra.mxu1 %v2260_v28  ;;  %v1740_v28 = vrot.slane %v41_v53, %v2712_v12  ;;  %v2390_v21 = vpack.c.bf16 %v149_v22, %v143_v55 }
 0x570   :  { %2263 = vmatprep.subr.bf16.mxu1 %v2262_v61  ;;  %v1744_v61 = vrot.slane %v41_v53, %v2715_v14  ;;  %v148_v53 = vld [vmem:[#allocation5 + $0x4a0] sm:$0xff] }
 0x573   :  { %2265 = vmatpush1.bf16.msra.mxu1 %v2264_v4  ;;  %v65_v4 = vld [vmem:[#allocation5 + $0x208] sm:$0xff] }
 0x574   :  { %2267 = vmatprep.subr.bf16.mxu1 %v2266_v33  ;;  %v2362_v38 = vpack.c.bf16 %v65_v4, %v59_v32  ;;  %v160_v32 = vld [vmem:[#allocation5 + $0x500] sm:$0xff]  ;;  %v167_v4 = vld [vmem:[#allocation5 + $0x538] sm:$0xff] }
 0x577   :  { %2269 = vmatpush1.bf16.msra.mxu1 %v2268_v39  ;;  %v58_v39 = vld [vmem:[#allocation5 + $0x1d0] sm:$0xff] }
 0x578   :  { %2271 = vmatprep.subr.bf16.mxu1 %v2270_v40  ;;  %v64_v40 = vld [vmem:[#allocation5 + $0x200] sm:$0xff] }
 0x579   :  { %v2364_v44 = vpack.c.bf16 %v64_v40, %v58_v39  ;;  %v172_v39 = vld [vmem:[#allocation5 + $0x560] sm:$0xff]  ;;  %v179_v40 = vld [vmem:[#allocation5 + $0x598] sm:$0xff] }
 0x57b   :  { %2273 = vmatpush1.bf16.msra.mxu1 %v2272_v45  ;;  %v2366_v45 = vpack.c.bf16 %v77_v41, %v71_v43 }
 0x57c   :  { %2275 = vmatprep.subr.bf16.mxu1 %v2274_v47  ;;  %v70_v47 = vld [vmem:[#allocation5 + $0x230] sm:$0xff] }
 0x57d   :  { %v2368_v54 = vpack.c.bf16 %v76_v48, %v70_v47  ;;  %v191_v47 = vld [vmem:[#allocation5 + $0x5f8] sm:$0xff]  ;;  %v197_v48 = vld [vmem:[#allocation5 + $0x628] sm:$0xff] }
 0x57f   :  { %2277 = vmatpush1.bf16.msra.mxu1 %v2276_v56  ;;  %v2370_v56 = vpack.c.bf16 %v89_v52, %v83_v49  ;;  %v2406_v52 = vpack.c.bf16 %v197_v48, %v191_v47 }
 0x580   :  { %2279 = vmatprep.subr.bf16.mxu1 %v2278_v58  ;;  %v82_v58 = vld [vmem:[#allocation5 + $0x290] sm:$0xff] }
 0x581   :  { %v2372_v51 = vpack.c.bf16 %v88_v59, %v82_v58  ;;  %v203_v58 = vld [vmem:[#allocation5 + $0x658] sm:$0xff]  ;;  %v209_v59 = vld [vmem:[#allocation5 + $0x688] sm:$0xff] }
 0x583   :  { %2281 = vmatpush1.bf16.msra.mxu1 %v2280_v62  ;;  %v2374_v62 = vpack.c.bf16 %v101_v60, %v95_v50  ;;  %v2410_v60 = vpack.c.bf16 %v209_v59, %v203_v58 }
 0x584   :  { %2283 = vmatprep.subr.bf16.mxu1 %v2282_v63  ;;  %v94_v63 = vld [vmem:[#allocation5 + $0x2f0] sm:$0xff] }
 0x585   :  { %v2376_v8 = vpack.c.bf16 %v100_v0, %v94_v63  ;;  %v215_v63 = vld [vmem:[#allocation5 + $0x6b8] sm:$0xff]  ;;  %v221_v0 = vld [vmem:[#allocation5 + $0x6e8] sm:$0xff] }
 0x587   :  { %2285 = vmatpush1.bf16.msra.mxu1 %v2284_v9  ;;  %v2378_v9 = vpack.c.bf16 %v113_v6, %v107_v1  ;;  %v2414_v6 = vpack.c.bf16 %v221_v0, %v215_v63 }
 0x588   :  { %2287 = vmatprep.subr.bf16.mxu1 %v2286_v46  ;;  %v106_v46 = vld [vmem:[#allocation5 + $0x350] sm:$0xff] }
 0x589   :  { %v2380_v11 = vpack.c.bf16 %v112_v2, %v106_v46  ;;  %v227_v46 = vld [vmem:[#allocation5 + $0x718] sm:$0xff]  ;;  %v233_v2 = vld [vmem:[#allocation5 + $0x748] sm:$0xff] }
 0x58b   :  { %2289 = vmatpush1.bf16.msra.mxu1 %v2288_v10  ;;  %v125_v10 = vld [vmem:[#allocation5 + $0x3e8] sm:$0xff] }
 0x58c   :  { %2291 = vmatprep.subr.bf16.mxu1 %v2290_v15  ;;  %v2382_v13 = vpack.c.bf16 %v125_v10, %v119_v57  ;;  %v118_v15 = vld [vmem:[#allocation5 + $0x3b0] sm:$0xff]  ;;  %v2418_v10 = vpack.c.bf16 %v233_v2, %v227_v46 }
 0x58f   :  { %2293 = vmatpush1.bf16.msra.mxu1 %v2292_v18  ;;  %v2384_v18 = vpack.c.bf16 %v124_v16, %v118_v15  ;;  %v235_v16 = vld [vmem:[#allocation5 + $0x750] ss:$8 sm:$0xf] }
 0x590   :  { %2359 = vmatprep.subr.bf16.mxu1 %v2358_v27  ;;  %v142_v27 = vld [vmem:[#allocation5 + $0x470] sm:$0xff]  ;;  %v237_v7 = vor.u32 %v236_v17, %v235_v16 }
 0x591   :  { %v2392_v29 = vpack.c.bf16 %v148_v53, %v142_v27 }
 0x592   :  { %v1826_v20 = vrot.slane %v237_v7, %v2712_v12  ;;  %v1834_v23 = vrot.slane %v237_v7, %v2722_v24  ;;  %v1830_v55 = vrot.slane %v237_v7, %v2715_v14  ;;  %v1842_v14 = vrot.slane %v237_v7, %v2732_v36 }
 0x625   :  { %v1817_v31 = vpop.f32.mrb[4].mxu1 }
 0x626   :  { %v2959_v33 = vadd.f32 %v1817_v31, %v1740_v28  ;;  %v1819_v5 = vpop.f32.mrb[5].mxu1  ;;  %v155_v28 = vld [vmem:[#allocation5 + $0x4d8] sm:$0xff]  ;;  %v154_v31 = vld [vmem:[#allocation5 + $0x4d0] sm:$0xff] }
 0x627   :  { %v1820_v34 = vadd.f32 %v1819_v5, %v1744_v61  ;;  %v161_v61 = vld [vmem:[#allocation5 + $0x508] sm:$0xff] }
 0x628   :  { %v2394_v30 = vpack.c.bf16 %v161_v61, %v155_v28  ;;  %v173_v5 = vld [vmem:[#allocation5 + $0x568] sm:$0xff] }
 0x629   :  { %v2068_v42 = vcombine.low %v2959_v33, %v1820_v34  ;;  %1917 = vmatprep.mubr.f32.mxu1 %v1820_v34  ;;  %1988 = vmatprep.mubr.f32.mxu0 %v1820_v34 }
 0x62a   :  { %1918 = vmatmul.mubr.f32.vlgmr.msra.gmra.mrb[6].mxu1 %v2959_v33  ;;  %1989 = vmatmul.mubr.f32.vlgmr.msra.gmra.mrb[14].mxu0 %v2959_v33 }
 0x62b   :  { %2128 = vst.sshfl [vmem:[%s2983_s2] sm:$0x33 pattern:$0x76325410] %v2068_v42  ;;  %2361 = vmatpush1.bf16.msra.mxu1 %v2360_v35  ;;  %2059 = vmatprep.mubr.f32.mxu1 %v1820_v34  ;;  %v2396_v34 = vpack.c.bf16 %v160_v32, %v154_v31  ;;  %v2398_v35 = vpack.c.bf16 %v173_v5, %v167_v4  ;;  %v185_v42 = vld [vmem:[#allocation5 + $0x5c8] sm:$0xff] }
 0x62c   :  { %2363 = vmatprep.subr.bf16.mxu1 %v2362_v38  ;;  %v166_v38 = vld [vmem:[#allocation5 + $0x530] sm:$0xff]  ;;  %v2402_v41 = vpack.c.bf16 %v185_v42, %v179_v40 }
 0x62d   :  { %v2400_v43 = vpack.c.bf16 %v172_v39, %v166_v38 }
 0x62f   :  { %2365 = vmatpush1.bf16.msra.mxu1 %v2364_v44  ;;  %v178_v44 = vld [vmem:[#allocation5 + $0x590] sm:$0xff] }
 0x630   :  { %2367 = vmatprep.subr.bf16.mxu1 %v2366_v45  ;;  %v184_v45 = vld [vmem:[#allocation5 + $0x5c0] sm:$0xff] }
 0x631   :  { %v2404_v49 = vpack.c.bf16 %v184_v45, %v178_v44 }
 0x633   :  { %2369 = vmatpush1.bf16.msra.mxu1 %v2368_v54  ;;  %v190_v54 = vld [vmem:[#allocation5 + $0x5f0] sm:$0xff] }
 0x634   :  { %2371 = vmatprep.subr.bf16.mxu1 %v2370_v56  ;;  %v196_v56 = vld [vmem:[#allocation5 + $0x620] sm:$0xff] }
 0x635   :  { %v2408_v50 = vpack.c.bf16 %v196_v56, %v190_v54 }
 0x637   :  { %2373 = vmatpush1.bf16.msra.mxu1 %v2372_v51  ;;  %v202_v51 = vld [vmem:[#allocation5 + $0x650] sm:$0xff] }
 0x638   :  { %2375 = vmatprep.subr.bf16.mxu1 %v2374_v62  ;;  %v208_v62 = vld [vmem:[#allocation5 + $0x680] sm:$0xff] }
 0x639   :  { %v2412_v1 = vpack.c.bf16 %v208_v62, %v202_v51 }
 0x63b   :  { %2377 = vmatpush1.bf16.msra.mxu1 %v2376_v8  ;;  %v214_v8 = vld [vmem:[#allocation5 + $0x6b0] sm:$0xff] }
 0x63c   :  { %2379 = vmatprep.subr.bf16.mxu1 %v2378_v9  ;;  %v220_v9 = vld [vmem:[#allocation5 + $0x6e0] sm:$0xff] }
 0x63d   :  { %v2416_v57 = vpack.c.bf16 %v220_v9, %v214_v8 }
 0x63f   :  { %2381 = vmatpush1.bf16.msra.mxu1 %v2380_v11  ;;  %v226_v11 = vld [vmem:[#allocation5 + $0x710] sm:$0xff] }
 0x640   :  { %2383 = vmatprep.subr.bf16.mxu1 %v2382_v13  ;;  %v232_v13 = vld [vmem:[#allocation5 + $0x740] sm:$0xff] }
 0x641   :  { %v2420_v15 = vpack.c.bf16 %v232_v13, %v226_v11 }
 0x643   :  { %2385 = vmatpush1.bf16.msra.mxu1 %v2384_v18  ;;  %v2479_v18 = vmov 1983009808  }
 0x644   :  { %2387 = vmatprep.subr.bf16.mxu1 %v2386_v19  ;;  %v2087_v19 = vunpack.c.l.s4 %v2479_v18 }
 0x646   :  { %v2088_v22 = vunpack.c.0.s8 %v2087_v19 }
 0x647   :  { %2389 = vmatpush1.bf16.msra.mxu1 %v2388_v26  ;;  %v1838_v26 = vrot.slane %v237_v7, %v2725_v25  ;;  %v1846_v25 = vrot.slane %v237_v7, %v2735_v37 }
 0x648   :  { %2391 = vmatprep.subr.bf16.mxu1 %v2390_v21 }
 0x64b   :  { %2393 = vmatpush1.bf16.msra.mxu1 %v2392_v29 }
 0x64c   :  { %2395 = vmatprep.subr.bf16.mxu1 %v2394_v30  ;;  %v2091_v30 = vsub.s32 %v2088_v22, %v2709_v3 }
 0x64f   :  { %2397 = vmatpush1.bf16.msra.mxu1 %v2396_v34 }
 0x650   :  { %2399 = vmatprep.subr.bf16.mxu1 %v2398_v35 }
 0x653   :  { %2401 = vmatpush1.bf16.msra.mxu1 %v2400_v43 }
 0x654   :  { %2403 = vmatprep.subr.bf16.mxu1 %v2402_v41 }
 0x657   :  { %2405 = vmatpush1.bf16.msra.mxu1 %v2404_v49 }
 0x658   :  { %2407 = vmatprep.subr.bf16.mxu1 %v2406_v52 }
 0x65b   :  { %2409 = vmatpush1.bf16.msra.mxu1 %v2408_v50 }
 0x65c   :  { %2411 = vmatprep.subr.bf16.mxu1 %v2410_v60 }
 0x65f   :  { %2413 = vmatpush1.bf16.msra.mxu1 %v2412_v1 }
 0x660   :  { %2415 = vmatprep.subr.bf16.mxu1 %v2414_v6 }
 0x663   :  { %2417 = vmatpush1.bf16.msra.mxu1 %v2416_v57 }
 0x664   :  { %2419 = vmatprep.subr.bf16.mxu1 %v2418_v10 }
 0x667   :  { %2421 = vmatpush1.bf16.msra.mxu1 %v2420_v15 }
 0x66a   :  { %2060 = vmatmul.mubr.f32.vlgmr.msra.gmra.mrb[8].mxu1 %v2959_v33 }
 0x6fd   :  { %v1919_v21 = vpop.f32.mrb[6].mxu1  ;;  %v1990_v27 = vpop.f32.mrb[14].mxu0 }
 0x6fe   :  { %v1920_v53 = vadd.f32 %v1919_v21, %v1826_v20  ;;  %v1991_v28 = vadd.f32 %v1990_v27, %v1834_v23  ;;  %v1921_v61 = vpop.f32.mrb[7].mxu1  ;;  %v1992_v33 = vpop.f32.mrb[15].mxu0 }
 0x6ff   :  { %v1922_v29 = vadd.f32 %v1921_v61, %v1830_v55  ;;  %v1993_v31 = vadd.f32 %v1992_v33, %v1838_v26 }
 0x701   :  { %v2084_v32 = vcombine.low %v1920_v53, %v1922_v29  ;;  %v2085_v4 = vcombine.low %v1991_v28, %v1993_v31 }
 0x703   :  { %v2092_v12 = vrot.slane %v2084_v32, %v2091_v30  ;;  %v2099_v5 = vrot.slane %v2085_v4, %v2091_v30 }
 0x705   :  { %v2100_v24 = vcombine.low %v2092_v12, %v2099_v5 }
 0x707   :  { %2111 = vst [vmem:[%s2983_s2 + $0x4] sm:$0xff] %v2100_v24 }
 0x73d   :  { %v2061_v34 = vpop.f32.mrb[8].mxu1 }
 0x73e   :  { %v2062_v35 = vadd.f32 %v2061_v34, %v1842_v14  ;;  %v2063_v38 = vpop.f32.mrb[9].mxu1 }
 0x73f   :  { %v2064_v39 = vadd.f32 %v2063_v38, %v1846_v25 }
 0x741   :  { %v2101_v40 = vcombine.low %v2062_v35, %v2064_v39 }
 0x743   :  { %2129 = vst.sshfl [vmem:[%s2983_s2 + $0xc] sm:$0x33 pattern:$0x76325410] %v2101_v40 }
 0x744   :  { %2117 = vsyncpa [#allocation6], 1 }

</bundles_post_ra>
